<compile_context>
chip_gen: v5e
topology: v5e:2x2
jax: 0.10.0
libtpu: 0.0.40
codegen_flags: <defaults>
</compile_context>

<pallas_src>
import math

import jax
import jax.numpy as jnp
import numpy as np
from jax.experimental import pallas as pl
from jax.experimental.pallas import tpu as pltpu

EPS = 1e-5
MAXNORM = 1.0 - EPS


# ------------------------ in-kernel hyperbolic primitives ------------------------

def _masked_rowsum(v, mask):
    if mask is not None:
        v = v * mask
    return jnp.sum(v, axis=1, keepdims=True)


def _k_log_map_zero(v, norm=None, mask=None):
    """log_map_zero; optionally reuse a precomputed row norm (saves an XLU reduce)."""
    if norm is None:
        norm = jnp.sqrt(_masked_rowsum(v * v, mask))
    atanh = jnp.minimum(norm, MAXNORM)         # reference uses a min-clamp, not atanh
    return (v + EPS) * pl.reciprocal(atanh * norm, approx=True)


def _k_exp_map_zero(z, mask=None):
    """exp_map_zero; returns (out, row_norm(out)).  ||tanh(n)/n * v|| == tanh(n)."""
    v = z + EPS
    norm_v = jnp.sqrt(_masked_rowsum(v * v, mask))
    t = jnp.tanh(norm_v)
    result = v * (t * pl.reciprocal(norm_v, approx=True))
    scale = jnp.where(t > MAXNORM, MAXNORM * pl.reciprocal(t + 1e-7, approx=True), 1.0)
    return result * scale, t * scale


def _k_h_add_colbias(u, bias, u_norm_sq, n_real, mask=None):
    """h_add(u, bias) with a (rows, 1) bias broadcast over columns.

    Reuses the threaded row-norm of u; the renorm norm is computed analytically
    from per-row scalars (no extra cross-lane reduce).  Returns (out, row_norm(out)).
    """
    v = bias + EPS                                       # (R, 1)
    u_rowsum = _masked_rowsum(u, mask)                   # only reduction in h_add
    dot_uv = 2.0 * v * u_rowsum                          # == 2*sum(u * v, axis=1)
    nu = u_norm_sq
    nv = v * v                                           # sum(v*v, axis=1) for (R,1) v
    denom = 1.0 + dot_uv + nv * nu
    inv_denom = pl.reciprocal(denom + EPS, approx=True)
    a = (1.0 + dot_uv + nv) * inv_denom                  # (R, 1)
    b = (1.0 - nu) * inv_denom                           # (R, 1)
    bv = b * v
    res = a * u + bv                                     # (R, N): bias term broadcasts
    res_nsq = a * a * nu + 2.0 * a * bv * u_rowsum + bv * bv * float(n_real)
    res_norm = jnp.sqrt(res_nsq)
    scale = jnp.where(res_norm > MAXNORM,
                      MAXNORM * pl.reciprocal(res_norm + 1e-7, approx=True), 1.0)
    return res * scale, res_norm * scale


# --------------------------------- Pallas wrapper --------------------------------

def hyperbolic_sage_conv(x, adj, embed, layer, embed_bias, layer_bias, *, tk=512):
    """Fused HyperbolicSageConv forward.

    x: (F, N), adj: (N, N) 0/1 adjacency, embed: (F, F), layer: (2F, O),
    embed_bias: (F, 1), layer_bias: (O, 1).  Returns (O, N) float32.
    """
    in_feats, n_nodes = x.shape
    out_feats = layer.shape[1]

    # ---- lane-dense node dimension: pad N up to a multiple of 128 ----------------
    n_pad = ((n_nodes + 127) // 128) * 128
    pad = n_pad - n_nodes
    xp = jnp.pad(x.astype(jnp.float32), ((0, 0), (0, pad)))
    # 0/1 adjacency is exact in bf16 -> halves HBM traffic of the only O(N^2) array.
    adjp = jnp.pad(adj, ((0, pad), (0, pad))).astype(jnp.bfloat16)

    # ---- contraction tile for the streamed adjacency (multiple of 128) -----------
    tk = max(128, min(tk, n_pad))
    tk = (tk // 128) * 128
    while n_pad % tk:
        tk -= 128
    num_k = n_pad // tk

    # layer is (2F, O); split + transpose in the wrapper so the kernel runs two
    # plain matmuls instead of an in-kernel concat / unaligned lane slice.
    w1 = layer[:in_feats, :].T.astype(jnp.float32)       # (O, F) acts on log(x)
    w2 = layer[in_feats:, :].T.astype(jnp.float32)       # (O, F) acts on log(neigh)

    def kernel(x_ref, adj_ref, embed_ref, w1_ref, w2_ref, eb_ref, lb_ref, out_ref,
               logx_s, logh_s, acc_s):
        k = pl.program_id(0)

        if n_nodes < n_pad:
            col = jax.lax.broadcasted_iota(jnp.int32, (1, n_pad), 1)
            mask = (col < n_nodes).astype(jnp.float32)
        else:
            mask = None

        # ---- prologue (k == 0): O(F*N) feature-side work, done once --------------
        @pl.when(k == 0)
        def _():
            log_x = _k_log_map_zero(x_ref[...], mask=mask)
            if mask is not None:
                log_x = log_x * mask
            logx_s[...] = log_x
            # TODO(synk): reference calls h_mul(self.embed_bias, x), which is
            # shape-inconsistent; self.embed (the (F,F) weight) is the intended operand.
            h, h_n = _k_exp_map_zero(
                jnp.dot(embed_ref[...], log_x, preferred_element_type=jnp.float32),
                mask=mask)
            h, h_n = _k_h_add_colbias(h, eb_ref[...], h_n * h_n, n_nodes, mask=mask)
            log_h = _k_log_map_zero(h, norm=h_n)
            if mask is not None:
                log_h = log_h * mask
            logh_s[...] = log_h.astype(logh_s.dtype)
            acc_s[...] = jnp.zeros_like(acc_s)

        # ---- streamed neighbour aggregation: acc += log(h)[:, k-tile] @ adj[k-tile, :]
        start = pl.multiple_of(k * tk, tk)
        acc_s[...] += jnp.dot(logh_s[:, pl.ds(start, tk)], adj_ref[...],
                              preferred_element_type=jnp.float32)

        # ---- epilogue (last k): exp/log maps + output layer -----------------------
        @pl.when(k == num_k - 1)
        def _():
            # TODO(synk): reference 'mm(adj, log(h)).sum(dim=1)' yields a 1-D tensor
            # that exp_map_zero / cat cannot accept; standard SAGE aggregation used.
            neigh, neigh_n = _k_exp_map_zero(acc_s[...], mask=mask)
            log_neigh = _k_log_map_zero(neigh, norm=neigh_n)
            if mask is not None:
                log_neigh = log_neigh * mask
            # h_mul(layer, cat([x, neigh], 0)): log is row-wise so the concat folds
            # into two matmuls against the pre-split weight halves.
            z = (jnp.dot(w1_ref[...], logx_s[...], preferred_element_type=jnp.float32)
                 + jnp.dot(w2_ref[...], log_neigh, preferred_element_type=jnp.float32))
            h2, h2_n = _k_exp_map_zero(z, mask=mask)
            h2, _ = _k_h_add_colbias(h2, lb_ref[...], h2_n * h2_n, n_nodes, mask=mask)
            out_ref[...] = h2.astype(out_ref.dtype)

    def resident(shape):
        return pl.BlockSpec(shape, lambda k: (0, 0))

    # explicit VMEM budget: adj tile double-buffered + resident (F,N)/(O,N) slabs.
    vmem_bytes = (2 * tk * n_pad * 2                      # adj tiles (bf16, 2 buffers)
                  + 2 * in_feats * n_pad * 4              # x
                  + 2 * out_feats * n_pad * 4             # output
                  + in_feats * n_pad * (4 + 2 + 4)        # log(x), log(h) bf16, acc
                  + 4 * (in_feats * in_feats + 2 * out_feats * in_feats
                         + in_feats + out_feats) * 4)     # weights / biases
    vmem_limit = int(min(64 << 20, max(32 << 20, 2 * vmem_bytes)))

    out = pl.pallas_call(
        kernel,
        out_shape=jax.ShapeDtypeStruct((out_feats, n_pad), jnp.float32),
        grid=(num_k,),
        in_specs=[
            resident((in_feats, n_pad)),                   # x          (resident)
            pl.BlockSpec((tk, n_pad), lambda k: (k, 0)),   # adj        (streamed)
            resident((in_feats, in_feats)),                # embed
            resident((out_feats, in_feats)),               # w1 = layer[:F].T
            resident((out_feats, in_feats)),               # w2 = layer[F:].T
            resident((in_feats, 1)),                       # embed_bias
            resident((out_feats, 1)),                      # layer_bias
        ],
        out_specs=resident((out_feats, n_pad)),
        scratch_shapes=[
            pltpu.VMEM((in_feats, n_pad), jnp.float32),    # log(x)
            pltpu.VMEM((in_feats, n_pad), jnp.bfloat16),   # log(h) (bf16 matmul lhs)
            pltpu.VMEM((in_feats, n_pad), jnp.float32),    # neighbour accumulator
        ],
        compiler_params=pltpu.CompilerParams(
            # TODO(synk): on v7x a second 'parallel' output-column grid axis (with a
            # two-pass finalization of the axis=1 norms) could occupy the 2nd TensorCore.
            dimension_semantics=("arbitrary",),
            vmem_limit_bytes=vmem_limit),
    )(xp, adjp, embed.astype(jnp.float32), w1, w2,
      embed_bias.astype(jnp.float32), layer_bias.astype(jnp.float32))
    return out[:, :n_nodes]


# ------------------------------- pure-JAX reference ------------------------------

def _ref_rownorm(v):
    return jnp.sqrt(jnp.sum(v * v, axis=1, keepdims=True))


def _ref_renorm(r, maxnorm):
    n = _ref_rownorm(r)
    return r * jnp.where(n > maxnorm, maxnorm / (n + 1e-7), 1.0)


def _ref_log_map_zero(v):
    norm = _ref_rownorm(v)
    atanh = jnp.minimum(norm, MAXNORM)
    return 1.0 / atanh / norm * (v + EPS)


def _ref_exp_map_zero(v):
    v = v + EPS
    n = _ref_rownorm(v)
    return _ref_renorm(jnp.tanh(n) / n * v, MAXNORM)


def _ref_h_add(u, v):
    v = v + EPS
    dot_uv = 2.0 * jnp.sum(u * v, axis=1, keepdims=True)
    nu = jnp.sum(u * u, axis=1, keepdims=True)
    nv = jnp.sum(v * v, axis=1, keepdims=True)
    denom = 1.0 + dot_uv + nv * nu
    res = (1.0 + dot_uv + nv) / (denom + EPS) * u + (1.0 - nu) / (denom + EPS) * v
    return _ref_renorm(res, MAXNORM)


def reference_forward(x, adj, embed, layer, embed_bias, layer_bias):
    h = _ref_exp_map_zero(embed @ _ref_log_map_zero(x))
    h = _ref_h_add(h, embed_bias)
    neigh = _ref_exp_map_zero(_ref_log_map_zero(h) @ adj)
    z = jnp.concatenate([x, neigh], axis=0)
    h2 = _ref_exp_map_zero(layer.T @ _ref_log_map_zero(z))
    h2 = _ref_h_add(h2, layer_bias)
    return h2


# -------------------------------------- main -------------------------------------

def _xavier_uniform(key, shape, gain):
    fan_out, fan_in = shape[0], shape[1]                 # torch convention for 2-D
    bound = gain * math.sqrt(6.0 / (fan_in + fan_out))
    return jax.random.uniform(key, shape, jnp.float32, -bound, bound)


if __name__ == "__main__":
    in_feats, out_feats, n_nodes = 32, 16, 200           # N pads to 256 -> masking + 2 adj tiles
    key = jax.random.PRNGKey(0)
    k1, k2, k3, k4 = jax.random.split(key, 4)

    gain = math.sqrt(2.0)                                # nn.init.calculate_gain('relu')
    embed = _xavier_uniform(k1, (in_feats, in_feats), gain)
    layer = _xavier_uniform(k2, (2 * in_feats, out_feats), gain)
    embed_bias = jnp.zeros((in_feats, 1), jnp.float32)
    layer_bias = jnp.zeros((out_feats, 1), jnp.float32)

    x = 0.1 * jax.random.normal(k3, (in_feats, n_nodes), jnp.float32)
    adj = (jax.random.uniform(k4, (n_nodes, n_nodes)) < 0.2).astype(jnp.float32)

    out = hyperbolic_sage_conv(x, adj, embed, layer, embed_bias, layer_bias, tk=128)
    out = jax.block_until_ready(out)

    ref = jax.block_until_ready(
        reference_forward(x, adj, embed, layer, embed_bias, layer_bias))

    assert out.shape == (out_feats, n_nodes)
    assert bool(jnp.all(jnp.isfinite(out)))
    # bf16 log(h)/adj matmul + EUP approximate reciprocals perturb results by ~0.5%.
    np.testing.assert_allclose(np.asarray(out), np.asarray(ref), rtol=2e-2, atol=2e-2)

    print("KERNEL_OK")
</pallas_src>

<mosaic_0001>
module attributes {stable_mosaic.version = 11 : i64} {
  func.func @kernel(%arg0: i32, %arg1: memref<32x256xf32, #tpu.memory_space<vmem>>, %arg2: memref<128x256xbf16, #tpu.memory_space<vmem>>, %arg3: memref<32x32xf32, #tpu.memory_space<vmem>>, %arg4: memref<16x32xf32, #tpu.memory_space<vmem>>, %arg5: memref<16x32xf32, #tpu.memory_space<vmem>>, %arg6: memref<32x1xf32, #tpu.memory_space<vmem>>, %arg7: memref<16x1xf32, #tpu.memory_space<vmem>>, %arg8: memref<16x256xf32, #tpu.memory_space<vmem>>, %arg9: memref<32x256xf32, #tpu.memory_space<vmem>>, %arg10: memref<32x256xbf16, #tpu.memory_space<vmem>>, %arg11: memref<32x256xf32, #tpu.memory_space<vmem>>) attributes {dimension_semantics = [#tpu.dimension_semantics<arbitrary>], iteration_bounds = array<i64: 2>, scalar_prefetch = 0 : i64, scratch_operands = 3 : i64, tpu.core_type = #tpu.core_type<tc>, window_params = [{pipeline_mode = #tpu.pipeline_mode<synchronous>, transform_indices = @transform_0, window_bounds = array<i64: 32, 256>}, {transform_indices = @transform_1, window_bounds = array<i64: 128, 256>}, {pipeline_mode = #tpu.pipeline_mode<synchronous>, transform_indices = @transform_2, window_bounds = array<i64: 32, 32>}, {pipeline_mode = #tpu.pipeline_mode<synchronous>, transform_indices = @transform_3, window_bounds = array<i64: 16, 32>}, {pipeline_mode = #tpu.pipeline_mode<synchronous>, transform_indices = @transform_4, window_bounds = array<i64: 16, 32>}, {pipeline_mode = #tpu.pipeline_mode<synchronous>, transform_indices = @transform_5, window_bounds = array<i64: 32, 1>}, {pipeline_mode = #tpu.pipeline_mode<synchronous>, transform_indices = @transform_6, window_bounds = array<i64: 16, 1>}, {pipeline_mode = #tpu.pipeline_mode<synchronous>, transform_indices = @transform_7, window_bounds = array<i64: 16, 256>}]} {
    %0 = tpu.iota {dimensions = array<i32: 1>} : vector<1x256xi32>
    %c200_i32 = arith.constant 200 : i32
    %1 = vector.broadcast %c200_i32 : i32 to vector<1x256xi32>
    %2 = arith.cmpi slt, %0, %1 : vector<1x256xi32>
    %3 = arith.extui %2 : vector<1x256xi1> to vector<1x256xi32>
    %4 = arith.sitofp %3 : vector<1x256xi32> to vector<1x256xf32>
    %c0_i32 = arith.constant 0 : i32
    %5 = arith.cmpi eq, %arg0, %c0_i32 : i32
    %6 = arith.extui %5 : i1 to i32
    %c0_i32_0 = arith.constant 0 : i32
    %7 = arith.cmpi ne, %6, %c0_i32_0 : i32
    scf.if %7 {
      %c0_8 = arith.constant 0 : index
      %c0_9 = arith.constant 0 : index
      %20 = vector.load %arg1[%c0_8, %c0_9] : memref<32x256xf32, #tpu.memory_space<vmem>>, vector<32x256xf32>
      %21 = arith.mulf %20, %20 : vector<32x256xf32>
      %22 = vector.broadcast %4 : vector<1x256xf32> to vector<32x256xf32>
      %23 = arith.mulf %21, %22 : vector<32x256xf32>
      %cst_10 = arith.constant dense<0.000000e+00> : vector<32xf32>
      %24 = vector.multi_reduction <add>, %23, %cst_10 [1] : vector<32x256xf32> to vector<32xf32>
      %25 = vector.shape_cast %24 : vector<32xf32> to vector<32x1xf32>
      %26 = math.sqrt %25 : vector<32x1xf32>
      %cst_11 = arith.constant 0.999989986 : f32
      %27 = vector.broadcast %cst_11 : f32 to vector<32x1xf32>
      %28 = arith.minimumf %26, %27 : vector<32x1xf32>
      %cst_12 = arith.constant 9.99999974E-6 : f32
      %29 = vector.broadcast %cst_12 : f32 to vector<32x256xf32>
      %30 = arith.addf %20, %29 : vector<32x256xf32>
      %31 = arith.mulf %28, %26 : vector<32x1xf32>
      %32 = tpu.reciprocal %31 {approx = true} : vector<32x1xf32> -> vector<32x1xf32>
      %33 = vector.broadcast %32 : vector<32x1xf32> to vector<32x256xf32>
      %34 = arith.mulf %30, %33 : vector<32x256xf32>
      %35 = vector.broadcast %4 : vector<1x256xf32> to vector<32x256xf32>
      %36 = arith.mulf %34, %35 : vector<32x256xf32>
      %c0_13 = arith.constant 0 : index
      %c0_14 = arith.constant 0 : index
      %37 = vector.load %arg9[%c0_13, %c0_14] : memref<32x256xf32, #tpu.memory_space<vmem>>, vector<32x256xf32>
      tpu.vector_store %arg9[%c0_13, %c0_14], %36 {strides = array<i32>} : memref<32x256xf32, #tpu.memory_space<vmem>>, vector<32x256xf32>,
      %c0_15 = arith.constant 0 : index
      %c0_16 = arith.constant 0 : index
      %38 = vector.load %arg3[%c0_15, %c0_16] : memref<32x32xf32, #tpu.memory_space<vmem>>, vector<32x32xf32>
      %cst_17 = arith.constant dense<0.000000e+00> : vector<32x256xf32>
      %39 = tpu.matmul %38, %36, %cst_17 {dimension_numbers = #tpu.dot_dimension_numbers<[1], [0], [0], [1], [0, 0, 1, 1], [], []>} : vector<32x32xf32>, vector<32x256xf32>, vector<32x256xf32> -> vector<32x256xf32>
      %cst_18 = arith.constant 9.99999974E-6 : f32
      %40 = vector.broadcast %cst_18 : f32 to vector<32x256xf32>
      %41 = arith.addf %39, %40 : vector<32x256xf32>
      %42 = arith.mulf %41, %41 : vector<32x256xf32>
      %43 = vector.broadcast %4 : vector<1x256xf32> to vector<32x256xf32>
      %44 = arith.mulf %42, %43 : vector<32x256xf32>
      %cst_19 = arith.constant dense<0.000000e+00> : vector<32xf32>
      %45 = vector.multi_reduction <add>, %44, %cst_19 [1] : vector<32x256xf32> to vector<32xf32>
      %46 = vector.shape_cast %45 : vector<32xf32> to vector<32x1xf32>
      %47 = math.sqrt %46 : vector<32x1xf32>
      %48 = math.tanh %47 : vector<32x1xf32>
      %49 = tpu.reciprocal %47 {approx = true} : vector<32x1xf32> -> vector<32x1xf32>
      %50 = arith.mulf %48, %49 : vector<32x1xf32>
      %51 = vector.broadcast %50 : vector<32x1xf32> to vector<32x256xf32>
      %52 = arith.mulf %41, %51 : vector<32x256xf32>
      %cst_20 = arith.constant 0.999989986 : f32
      %53 = vector.broadcast %cst_20 : f32 to vector<32x1xf32>
      %54 = arith.cmpf ogt, %48, %53 : vector<32x1xf32>
      %cst_21 = arith.constant 1.000000e-07 : f32
      %55 = vector.broadcast %cst_21 : f32 to vector<32x1xf32>
      %56 = arith.addf %48, %55 : vector<32x1xf32>
      %57 = tpu.reciprocal %56 {approx = true} : vector<32x1xf32> -> vector<32x1xf32>
      %cst_22 = arith.constant 0.999989986 : f32
      %58 = vector.broadcast %cst_22 : f32 to vector<32x1xf32>
      %59 = arith.mulf %58, %57 : vector<32x1xf32>
      %cst_23 = arith.constant 1.000000e+00 : f32
      %60 = vector.broadcast %cst_23 : f32 to vector<32x1xf32>
      %61 = arith.select %54, %59, %60 : vector<32x1xi1>, vector<32x1xf32>
      %62 = vector.broadcast %61 : vector<32x1xf32> to vector<32x256xf32>
      %63 = arith.mulf %52, %62 : vector<32x256xf32>
      %64 = arith.mulf %48, %61 : vector<32x1xf32>
      %c0_24 = arith.constant 0 : index
      %c0_25 = arith.constant 0 : index
      %65 = vector.load %arg6[%c0_24, %c0_25] : memref<32x1xf32, #tpu.memory_space<vmem>>, vector<32x1xf32>
      %66 = arith.mulf %64, %64 : vector<32x1xf32>
      %cst_26 = arith.constant 9.99999974E-6 : f32
      %67 = vector.broadcast %cst_26 : f32 to vector<32x1xf32>
      %68 = arith.addf %65, %67 : vector<32x1xf32>
      %69 = vector.broadcast %4 : vector<1x256xf32> to vector<32x256xf32>
      %70 = arith.mulf %63, %69 : vector<32x256xf32>
      %cst_27 = arith.constant dense<0.000000e+00> : vector<32xf32>
      %71 = vector.multi_reduction <add>, %70, %cst_27 [1] : vector<32x256xf32> to vector<32xf32>
      %72 = vector.shape_cast %71 : vector<32xf32> to vector<32x1xf32>
      %cst_28 = arith.constant 2.000000e+00 : f32
      %73 = vector.broadcast %cst_28 : f32 to vector<32x1xf32>
      %74 = arith.mulf %73, %68 : vector<32x1xf32>
      %75 = arith.mulf %74, %72 : vector<32x1xf32>
      %76 = arith.mulf %68, %68 : vector<32x1xf32>
      %cst_29 = arith.constant 1.000000e+00 : f32
      %77 = vector.broadcast %cst_29 : f32 to vector<32x1xf32>
      %78 = arith.addf %77, %75 : vector<32x1xf32>
      %79 = arith.mulf %76, %66 : vector<32x1xf32>
      %80 = arith.addf %78, %79 : vector<32x1xf32>
      %cst_30 = arith.constant 9.99999974E-6 : f32
      %81 = vector.broadcast %cst_30 : f32 to vector<32x1xf32>
      %82 = arith.addf %80, %81 : vector<32x1xf32>
      %83 = tpu.reciprocal %82 {approx = true} : vector<32x1xf32> -> vector<32x1xf32>
      %cst_31 = arith.constant 1.000000e+00 : f32
      %84 = vector.broadcast %cst_31 : f32 to vector<32x1xf32>
      %85 = arith.addf %84, %75 : vector<32x1xf32>
      %86 = arith.addf %85, %76 : vector<32x1xf32>
      %87 = arith.mulf %86, %83 : vector<32x1xf32>
      %cst_32 = arith.constant 1.000000e+00 : f32
      %88 = vector.broadcast %cst_32 : f32 to vector<32x1xf32>
      %89 = arith.subf %88, %66 : vector<32x1xf32>
      %90 = arith.mulf %89, %83 : vector<32x1xf32>
      %91 = arith.mulf %90, %68 : vector<32x1xf32>
      %92 = vector.broadcast %87 : vector<32x1xf32> to vector<32x256xf32>
      %93 = arith.mulf %92, %63 : vector<32x256xf32>
      %94 = vector.broadcast %91 : vector<32x1xf32> to vector<32x256xf32>
      %95 = arith.addf %93, %94 : vector<32x256xf32>
      %96 = arith.mulf %87, %87 : vector<32x1xf32>
      %97 = arith.mulf %96, %66 : vector<32x1xf32>
      %cst_33 = arith.constant 2.000000e+00 : f32
      %98 = vector.broadcast %cst_33 : f32 to vector<32x1xf32>
      %99 = arith.mulf %98, %87 : vector<32x1xf32>
      %100 = arith.mulf %99, %91 : vector<32x1xf32>
      %101 = arith.mulf %100, %72 : vector<32x1xf32>
      %102 = arith.addf %97, %101 : vector<32x1xf32>
      %103 = arith.mulf %91, %91 : vector<32x1xf32>
      %cst_34 = arith.constant 2.000000e+02 : f32
      %104 = vector.broadcast %cst_34 : f32 to vector<32x1xf32>
      %105 = arith.mulf %103, %104 : vector<32x1xf32>
      %106 = arith.addf %102, %105 : vector<32x1xf32>
      %107 = math.sqrt %106 : vector<32x1xf32>
      %cst_35 = arith.constant 0.999989986 : f32
      %108 = vector.broadcast %cst_35 : f32 to vector<32x1xf32>
      %109 = arith.cmpf ogt, %107, %108 : vector<32x1xf32>
      %cst_36 = arith.constant 1.000000e-07 : f32
      %110 = vector.broadcast %cst_36 : f32 to vector<32x1xf32>
      %111 = arith.addf %107, %110 : vector<32x1xf32>
      %112 = tpu.reciprocal %111 {approx = true} : vector<32x1xf32> -> vector<32x1xf32>
      %cst_37 = arith.constant 0.999989986 : f32
      %113 = vector.broadcast %cst_37 : f32 to vector<32x1xf32>
      %114 = arith.mulf %113, %112 : vector<32x1xf32>
      %cst_38 = arith.constant 1.000000e+00 : f32
      %115 = vector.broadcast %cst_38 : f32 to vector<32x1xf32>
      %116 = arith.select %109, %114, %115 : vector<32x1xi1>, vector<32x1xf32>
      %117 = vector.broadcast %116 : vector<32x1xf32> to vector<32x256xf32>
      %118 = arith.mulf %95, %117 : vector<32x256xf32>
      %119 = arith.mulf %107, %116 : vector<32x1xf32>
      %cst_39 = arith.constant 0.999989986 : f32
      %120 = vector.broadcast %cst_39 : f32 to vector<32x1xf32>
      %121 = arith.minimumf %119, %120 : vector<32x1xf32>
      %cst_40 = arith.constant 9.99999974E-6 : f32
      %122 = vector.broadcast %cst_40 : f32 to vector<32x256xf32>
      %123 = arith.addf %118, %122 : vector<32x256xf32>
      %124 = arith.mulf %121, %119 : vector<32x1xf32>
      %125 = tpu.reciprocal %124 {approx = true} : vector<32x1xf32> -> vector<32x1xf32>
      %126 = vector.broadcast %125 : vector<32x1xf32> to vector<32x256xf32>
      %127 = arith.mulf %123, %126 : vector<32x256xf32>
      %128 = vector.broadcast %4 : vector<1x256xf32> to vector<32x256xf32>
      %129 = arith.mulf %127, %128 : vector<32x256xf32>
      %130 = arith.truncf %129 : vector<32x256xf32> to vector<32x256xbf16>
      %c0_41 = arith.constant 0 : index
      %c0_42 = arith.constant 0 : index
      %131 = vector.load %arg10[%c0_41, %c0_42] : memref<32x256xbf16, #tpu.memory_space<vmem>>, vector<32x256xbf16>
      tpu.vector_store %arg10[%c0_41, %c0_42], %130 {strides = array<i32>} : memref<32x256xbf16, #tpu.memory_space<vmem>>, vector<32x256xbf16>,
      %cst_43 = arith.constant 0.000000e+00 : f32
      %132 = vector.broadcast %cst_43 : f32 to vector<32x256xf32>
      %c0_44 = arith.constant 0 : index
      %c0_45 = arith.constant 0 : index
      %133 = vector.load %arg11[%c0_44, %c0_45] : memref<32x256xf32, #tpu.memory_space<vmem>>, vector<32x256xf32>
      tpu.vector_store %arg11[%c0_44, %c0_45], %132 {strides = array<i32>} : memref<32x256xf32, #tpu.memory_space<vmem>>, vector<32x256xf32>,
    } else {
    }
    %c128_i32 = arith.constant 128 : i32
    %8 = arith.muli %arg0, %c128_i32 : i32
    %9 = tpu.assume_multiple %8, 128 : i32
    %c0 = arith.constant 0 : index
    %c0_1 = arith.constant 0 : index
    %10 = vector.load %arg11[%c0, %c0_1] : memref<32x256xf32, #tpu.memory_space<vmem>>, vector<32x256xf32>
    %c0_2 = arith.constant 0 : index
    %11 = arith.index_cast %9 : i32 to index
    %12 = vector.load %arg10[%c0_2, %11] : memref<32x256xbf16, #tpu.memory_space<vmem>>, vector<32x128xbf16>
    %c0_3 = arith.constant 0 : index
    %c0_4 = arith.constant 0 : index
    %13 = vector.load %arg2[%c0_3, %c0_4] : memref<128x256xbf16, #tpu.memory_space<vmem>>, vector<128x256xbf16>
    %cst = arith.constant dense<0.000000e+00> : vector<32x256xf32>
    %14 = tpu.matmul %12, %13, %cst {dimension_numbers = #tpu.dot_dimension_numbers<[1], [0], [0], [1], [0, 0, 1, 1], [], []>} : vector<32x128xbf16>, vector<128x256xbf16>, vector<32x256xf32> -> vector<32x256xf32>
    %15 = arith.addf %10, %14 : vector<32x256xf32>
    %c0_5 = arith.constant 0 : index
    %c0_6 = arith.constant 0 : index
    %16 = vector.load %arg11[%c0_5, %c0_6] : memref<32x256xf32, #tpu.memory_space<vmem>>, vector<32x256xf32>
    tpu.vector_store %arg11[%c0_5, %c0_6], %15 {strides = array<i32>} : memref<32x256xf32, #tpu.memory_space<vmem>>, vector<32x256xf32>,
    %c1_i32 = arith.constant 1 : i32
    %17 = arith.cmpi eq, %arg0, %c1_i32 : i32
    %18 = arith.extui %17 : i1 to i32
    %c0_i32_7 = arith.constant 0 : i32
    %19 = arith.cmpi ne, %18, %c0_i32_7 : i32
    scf.if %19 {
      %c0_8 = arith.constant 0 : index
      %c0_9 = arith.constant 0 : index
      %20 = vector.load %arg11[%c0_8, %c0_9] : memref<32x256xf32, #tpu.memory_space<vmem>>, vector<32x256xf32>
      %cst_10 = arith.constant 9.99999974E-6 : f32
      %21 = vector.broadcast %cst_10 : f32 to vector<32x256xf32>
      %22 = arith.addf %20, %21 : vector<32x256xf32>
      %23 = arith.mulf %22, %22 : vector<32x256xf32>
      %24 = vector.broadcast %4 : vector<1x256xf32> to vector<32x256xf32>
      %25 = arith.mulf %23, %24 : vector<32x256xf32>
      %cst_11 = arith.constant dense<0.000000e+00> : vector<32xf32>
      %26 = vector.multi_reduction <add>, %25, %cst_11 [1] : vector<32x256xf32> to vector<32xf32>
      %27 = vector.shape_cast %26 : vector<32xf32> to vector<32x1xf32>
      %28 = math.sqrt %27 : vector<32x1xf32>
      %29 = math.tanh %28 : vector<32x1xf32>
      %30 = tpu.reciprocal %28 {approx = true} : vector<32x1xf32> -> vector<32x1xf32>
      %31 = arith.mulf %29, %30 : vector<32x1xf32>
      %32 = vector.broadcast %31 : vector<32x1xf32> to vector<32x256xf32>
      %33 = arith.mulf %22, %32 : vector<32x256xf32>
      %cst_12 = arith.constant 0.999989986 : f32
      %34 = vector.broadcast %cst_12 : f32 to vector<32x1xf32>
      %35 = arith.cmpf ogt, %29, %34 : vector<32x1xf32>
      %cst_13 = arith.constant 1.000000e-07 : f32
      %36 = vector.broadcast %cst_13 : f32 to vector<32x1xf32>
      %37 = arith.addf %29, %36 : vector<32x1xf32>
      %38 = tpu.reciprocal %37 {approx = true} : vector<32x1xf32> -> vector<32x1xf32>
      %cst_14 = arith.constant 0.999989986 : f32
      %39 = vector.broadcast %cst_14 : f32 to vector<32x1xf32>
      %40 = arith.mulf %39, %38 : vector<32x1xf32>
      %cst_15 = arith.constant 1.000000e+00 : f32
      %41 = vector.broadcast %cst_15 : f32 to vector<32x1xf32>
      %42 = arith.select %35, %40, %41 : vector<32x1xi1>, vector<32x1xf32>
      %43 = vector.broadcast %42 : vector<32x1xf32> to vector<32x256xf32>
      %44 = arith.mulf %33, %43 : vector<32x256xf32>
      %45 = arith.mulf %29, %42 : vector<32x1xf32>
      %cst_16 = arith.constant 0.999989986 : f32
      %46 = vector.broadcast %cst_16 : f32 to vector<32x1xf32>
      %47 = arith.minimumf %45, %46 : vector<32x1xf32>
      %cst_17 = arith.constant 9.99999974E-6 : f32
      %48 = vector.broadcast %cst_17 : f32 to vector<32x256xf32>
      %49 = arith.addf %44, %48 : vector<32x256xf32>
      %50 = arith.mulf %47, %45 : vector<32x1xf32>
      %51 = tpu.reciprocal %50 {approx = true} : vector<32x1xf32> -> vector<32x1xf32>
      %52 = vector.broadcast %51 : vector<32x1xf32> to vector<32x256xf32>
      %53 = arith.mulf %49, %52 : vector<32x256xf32>
      %54 = vector.broadcast %4 : vector<1x256xf32> to vector<32x256xf32>
      %55 = arith.mulf %53, %54 : vector<32x256xf32>
      %c0_18 = arith.constant 0 : index
      %c0_19 = arith.constant 0 : index
      %56 = vector.load %arg4[%c0_18, %c0_19] : memref<16x32xf32, #tpu.memory_space<vmem>>, vector<16x32xf32>
      %c0_20 = arith.constant 0 : index
      %c0_21 = arith.constant 0 : index
      %57 = vector.load %arg9[%c0_20, %c0_21] : memref<32x256xf32, #tpu.memory_space<vmem>>, vector<32x256xf32>
      %cst_22 = arith.constant dense<0.000000e+00> : vector<16x256xf32>
      %58 = tpu.matmul %56, %57, %cst_22 {dimension_numbers = #tpu.dot_dimension_numbers<[1], [0], [0], [1], [0, 0, 1, 1], [], []>} : vector<16x32xf32>, vector<32x256xf32>, vector<16x256xf32> -> vector<16x256xf32>
      %c0_23 = arith.constant 0 : index
      %c0_24 = arith.constant 0 : index
      %59 = vector.load %arg5[%c0_23, %c0_24] : memref<16x32xf32, #tpu.memory_space<vmem>>, vector<16x32xf32>
      %cst_25 = arith.constant dense<0.000000e+00> : vector<16x256xf32>
      %60 = tpu.matmul %59, %55, %cst_25 {dimension_numbers = #tpu.dot_dimension_numbers<[1], [0], [0], [1], [0, 0, 1, 1], [], []>} : vector<16x32xf32>, vector<32x256xf32>, vector<16x256xf32> -> vector<16x256xf32>
      %61 = arith.addf %58, %60 : vector<16x256xf32>
      %cst_26 = arith.constant 9.99999974E-6 : f32
      %62 = vector.broadcast %cst_26 : f32 to vector<16x256xf32>
      %63 = arith.addf %61, %62 : vector<16x256xf32>
      %64 = arith.mulf %63, %63 : vector<16x256xf32>
      %65 = vector.broadcast %4 : vector<1x256xf32> to vector<16x256xf32>
      %66 = arith.mulf %64, %65 : vector<16x256xf32>
      %cst_27 = arith.constant dense<0.000000e+00> : vector<16xf32>
      %67 = vector.multi_reduction <add>, %66, %cst_27 [1] : vector<16x256xf32> to vector<16xf32>
      %68 = vector.shape_cast %67 : vector<16xf32> to vector<16x1xf32>
      %69 = math.sqrt %68 : vector<16x1xf32>
      %70 = math.tanh %69 : vector<16x1xf32>
      %71 = tpu.reciprocal %69 {approx = true} : vector<16x1xf32> -> vector<16x1xf32>
      %72 = arith.mulf %70, %71 : vector<16x1xf32>
      %73 = vector.broadcast %72 : vector<16x1xf32> to vector<16x256xf32>
      %74 = arith.mulf %63, %73 : vector<16x256xf32>
      %cst_28 = arith.constant 0.999989986 : f32
      %75 = vector.broadcast %cst_28 : f32 to vector<16x1xf32>
      %76 = arith.cmpf ogt, %70, %75 : vector<16x1xf32>
      %cst_29 = arith.constant 1.000000e-07 : f32
      %77 = vector.broadcast %cst_29 : f32 to vector<16x1xf32>
      %78 = arith.addf %70, %77 : vector<16x1xf32>
      %79 = tpu.reciprocal %78 {approx = true} : vector<16x1xf32> -> vector<16x1xf32>
      %cst_30 = arith.constant 0.999989986 : f32
      %80 = vector.broadcast %cst_30 : f32 to vector<16x1xf32>
      %81 = arith.mulf %80, %79 : vector<16x1xf32>
      %cst_31 = arith.constant 1.000000e+00 : f32
      %82 = vector.broadcast %cst_31 : f32 to vector<16x1xf32>
      %83 = arith.select %76, %81, %82 : vector<16x1xi1>, vector<16x1xf32>
      %84 = vector.broadcast %83 : vector<16x1xf32> to vector<16x256xf32>
      %85 = arith.mulf %74, %84 : vector<16x256xf32>
      %86 = arith.mulf %70, %83 : vector<16x1xf32>
      %c0_32 = arith.constant 0 : index
      %c0_33 = arith.constant 0 : index
      %87 = vector.load %arg7[%c0_32, %c0_33] : memref<16x1xf32, #tpu.memory_space<vmem>>, vector<16x1xf32>
      %88 = arith.mulf %86, %86 : vector<16x1xf32>
      %cst_34 = arith.constant 9.99999974E-6 : f32
      %89 = vector.broadcast %cst_34 : f32 to vector<16x1xf32>
      %90 = arith.addf %87, %89 : vector<16x1xf32>
      %91 = vector.broadcast %4 : vector<1x256xf32> to vector<16x256xf32>
      %92 = arith.mulf %85, %91 : vector<16x256xf32>
      %cst_35 = arith.constant dense<0.000000e+00> : vector<16xf32>
      %93 = vector.multi_reduction <add>, %92, %cst_35 [1] : vector<16x256xf32> to vector<16xf32>
      %94 = vector.shape_cast %93 : vector<16xf32> to vector<16x1xf32>
      %cst_36 = arith.constant 2.000000e+00 : f32
      %95 = vector.broadcast %cst_36 : f32 to vector<16x1xf32>
      %96 = arith.mulf %95, %90 : vector<16x1xf32>
      %97 = arith.mulf %96, %94 : vector<16x1xf32>
      %98 = arith.mulf %90, %90 : vector<16x1xf32>
      %cst_37 = arith.constant 1.000000e+00 : f32
      %99 = vector.broadcast %cst_37 : f32 to vector<16x1xf32>
      %100 = arith.addf %99, %97 : vector<16x1xf32>
      %101 = arith.mulf %98, %88 : vector<16x1xf32>
      %102 = arith.addf %100, %101 : vector<16x1xf32>
      %cst_38 = arith.constant 9.99999974E-6 : f32
      %103 = vector.broadcast %cst_38 : f32 to vector<16x1xf32>
      %104 = arith.addf %102, %103 : vector<16x1xf32>
      %105 = tpu.reciprocal %104 {approx = true} : vector<16x1xf32> -> vector<16x1xf32>
      %cst_39 = arith.constant 1.000000e+00 : f32
      %106 = vector.broadcast %cst_39 : f32 to vector<16x1xf32>
      %107 = arith.addf %106, %97 : vector<16x1xf32>
      %108 = arith.addf %107, %98 : vector<16x1xf32>
      %109 = arith.mulf %108, %105 : vector<16x1xf32>
      %cst_40 = arith.constant 1.000000e+00 : f32
      %110 = vector.broadcast %cst_40 : f32 to vector<16x1xf32>
      %111 = arith.subf %110, %88 : vector<16x1xf32>
      %112 = arith.mulf %111, %105 : vector<16x1xf32>
      %113 = arith.mulf %112, %90 : vector<16x1xf32>
      %114 = vector.broadcast %109 : vector<16x1xf32> to vector<16x256xf32>
      %115 = arith.mulf %114, %85 : vector<16x256xf32>
      %116 = vector.broadcast %113 : vector<16x1xf32> to vector<16x256xf32>
      %117 = arith.addf %115, %116 : vector<16x256xf32>
      %118 = arith.mulf %109, %109 : vector<16x1xf32>
      %119 = arith.mulf %118, %88 : vector<16x1xf32>
      %cst_41 = arith.constant 2.000000e+00 : f32
      %120 = vector.broadcast %cst_41 : f32 to vector<16x1xf32>
      %121 = arith.mulf %120, %109 : vector<16x1xf32>
      %122 = arith.mulf %121, %113 : vector<16x1xf32>
      %123 = arith.mulf %122, %94 : vector<16x1xf32>
      %124 = arith.addf %119, %123 : vector<16x1xf32>
      %125 = arith.mulf %113, %113 : vector<16x1xf32>
      %cst_42 = arith.constant 2.000000e+02 : f32
      %126 = vector.broadcast %cst_42 : f32 to vector<16x1xf32>
      %127 = arith.mulf %125, %126 : vector<16x1xf32>
      %128 = arith.addf %124, %127 : vector<16x1xf32>
      %129 = math.sqrt %128 : vector<16x1xf32>
      %cst_43 = arith.constant 0.999989986 : f32
      %130 = vector.broadcast %cst_43 : f32 to vector<16x1xf32>
      %131 = arith.cmpf ogt, %129, %130 : vector<16x1xf32>
      %cst_44 = arith.constant 1.000000e-07 : f32
      %132 = vector.broadcast %cst_44 : f32 to vector<16x1xf32>
      %133 = arith.addf %129, %132 : vector<16x1xf32>
      %134 = tpu.reciprocal %133 {approx = true} : vector<16x1xf32> -> vector<16x1xf32>
      %cst_45 = arith.constant 0.999989986 : f32
      %135 = vector.broadcast %cst_45 : f32 to vector<16x1xf32>
      %136 = arith.mulf %135, %134 : vector<16x1xf32>
      %cst_46 = arith.constant 1.000000e+00 : f32
      %137 = vector.broadcast %cst_46 : f32 to vector<16x1xf32>
      %138 = arith.select %131, %136, %137 : vector<16x1xi1>, vector<16x1xf32>
      %139 = vector.broadcast %138 : vector<16x1xf32> to vector<16x256xf32>
      %140 = arith.mulf %117, %139 : vector<16x256xf32>
      %c0_47 = arith.constant 0 : index
      %c0_48 = arith.constant 0 : index
      %141 = vector.load %arg8[%c0_47, %c0_48] : memref<16x256xf32, #tpu.memory_space<vmem>>, vector<16x256xf32>
      tpu.vector_store %arg8[%c0_47, %c0_48], %140 {strides = array<i32>} : memref<16x256xf32, #tpu.memory_space<vmem>>, vector<16x256xf32>,
    } else {
    }
    return
  }
  func.func @transform_0(%arg0: i32) -> (i32, i32) {
    %c0_i32 = arith.constant 0 : i32
    %c0_i32_0 = arith.constant 0 : i32
    %c0_i32_1 = arith.constant 0 : i32
    return %c0_i32, %c0_i32_0 : i32, i32
  }
  func.func @transform_1(%arg0: i32) -> (i32, i32) {
    %c0_i32 = arith.constant 0 : i32
    %c0_i32_0 = arith.constant 0 : i32
    return %arg0, %c0_i32 : i32, i32
  }
  func.func @transform_2(%arg0: i32) -> (i32, i32) {
    %c0_i32 = arith.constant 0 : i32
    %c0_i32_0 = arith.constant 0 : i32
    %c0_i32_1 = arith.constant 0 : i32
    return %c0_i32, %c0_i32_0 : i32, i32
  }
  func.func @transform_3(%arg0: i32) -> (i32, i32) {
    %c0_i32 = arith.constant 0 : i32
    %c0_i32_0 = arith.constant 0 : i32
    %c0_i32_1 = arith.constant 0 : i32
    return %c0_i32, %c0_i32_0 : i32, i32
  }
  func.func @transform_4(%arg0: i32) -> (i32, i32) {
    %c0_i32 = arith.constant 0 : i32
    %c0_i32_0 = arith.constant 0 : i32
    %c0_i32_1 = arith.constant 0 : i32
    return %c0_i32, %c0_i32_0 : i32, i32
  }
  func.func @transform_5(%arg0: i32) -> (i32, i32) {
    %c0_i32 = arith.constant 0 : i32
    %c0_i32_0 = arith.constant 0 : i32
    %c0_i32_1 = arith.constant 0 : i32
    return %c0_i32, %c0_i32_0 : i32, i32
  }
  func.func @transform_6(%arg0: i32) -> (i32, i32) {
    %c0_i32 = arith.constant 0 : i32
    %c0_i32_0 = arith.constant 0 : i32
    %c0_i32_1 = arith.constant 0 : i32
    return %c0_i32, %c0_i32_0 : i32, i32
  }
  func.func @transform_7(%arg0: i32) -> (i32, i32) {
    %c0_i32 = arith.constant 0 : i32
    %c0_i32_0 = arith.constant 0 : i32
    %c0_i32_1 = arith.constant 0 : i32
    return %c0_i32, %c0_i32_0 : i32, i32
  }
}

</mosaic_0001>

<bundles_post_ra>
// kernel: tpu_custom_call.1
= control target key start
LH: loop header
LB: loop body
LE: loop exit
PB: predicated region body
PF: predicated region fallthrough
CT: control target
= control target key end

     0   :  { %12 = vsyncpa [#allocation6], 0  ;;  %s2870_s0 = inlined_call_operand.hbm [shape: f32[32,256], index: 0, kind: input, shape index: {}]   ;;  %s2871_s1 = inlined_call_operand.hbm [shape: bf16[256,256], index: 1, kind: input, shape index: {}]   ;;  %s2872_s2 = inlined_call_operand.vmem [shape: f32[32,32], index: 2, kind: input, shape index: {}]   ;;  %s2873_s3 = inlined_call_operand.vmem [shape: f32[16,32], index: 3, kind: input, shape index: {}]   ;;  %s2874_s4 = inlined_call_operand.hbm [shape: f32[16,32], index: 4, kind: input, shape index: {}]   ;;  %s2875_s5 = inlined_call_operand.vmem [shape: f32[32,1], index: 5, kind: input, shape index: {}]   ;;  %s2876_s6 = inlined_call_operand.vmem [shape: f32[16,1], index: 6, kind: input, shape index: {}]   ;;  %s2877_s7 = inlined_call_operand.hbm [shape: f32[16,256], index: 7, kind: output, shape index: {}]  }
   0x1   :  { %13 = vsyncpa [#allocation9], 0 }
   0x2   :  { %15 = vsyncpa [#allocation9 + $0x1], 0 }
   0x3   :  { %16 = vsyncpa [#allocation7], 0  ;;  %s2390_s24 = smov 0   ;;  %s2392_s25 = smov 0  }
   0x4   :  { %s2394_s26 = smov 0   ;;  %s2396_s27 = smov 0  }
   0x5 LB: > { %s2409_s28 = sadd.s32 4294967295, %s2335_s27   ;;  %p63_p0 = scmp.ne.s32.totalorder %s2327_s25, %s2323_s24  ;;  %s2335_s27 = sphi %s2396_s27, %s2886_s27   ;;  %s2331_s26 = sphi %s2394_s26, %s2885_s26   ;;  %s2327_s25 = sphi %s2392_s25, %s2884_s25   ;;  %s2323_s24 = sphi %s2390_s24, %s2883_s24  }
   0x6   : > { %p64_p1 = scmp.eq.s32.totalorder %s2409_s28, 0  ;;  %p1787_p2 = scmp.ge.s32.totalorder %s2335_s27, 1 }
   0x7   : > { %p200_p3 = scmp.lt.s32.totalorder %s2335_s27, 3  ;;  %p1788_p4 = scmp.ne.s32.totalorder %s2409_s28, 0 }
   0x8   : > { %p2418_p5 = por %p64_p1, %p63_p0  ;;  %s231_s9 = sshll.u32 %s2874_s4, 4  ;;  %s232_s9 = int_to_ptr.hbm [resolvable:$true] %s231_s9 }
   0x9   : > { %p2425_p6 = pnand %p1787_p2, %p200_p3  ;;  %s2337_s11 = smov [#allocation10]  }
   0xa   : > { %s233_s12 = sshll.u32 %s2337_s11, 4  ;;  %s211_s15 = sshll.u32 %s2870_s0, 4  ;;  %s234_s12 = int_to_ptr.vmem [resolvable:$true] %s233_s12  ;;  %s212_s15 = int_to_ptr.hbm [resolvable:$true] %s211_s15 }
   0xb   : > { %p1954_p7 = pneg %p2425_p6  ;;  %s2878_s16 = smov 128  }
   0xc   : > { %s2339_s17 = smov 8   ;;  %s2340_s18 = smov [#allocation5]  }
   0xd   : > { %p1955_p8 = pnand %p1954_p7, %p64_p1  ;;  %s213_s19 = sshll.u32 %s2340_s18, 4  ;;  %s214_s19 = int_to_ptr.vmem [resolvable:$true] %s213_s19 }
   0xe   : > { %s2341_s20 = smov 256   ;;  %s2342_s21 = smov 16  }
   0xf   : > { %1960 = dma.hbm_to_vmem [thread:$0]  (!%p1955_p8), %s232_s9, 256, %s234_s12, [#allocation9], %s2878_s16, %s2878_s16, %s2339_s17  }
  0x10   : > { %1957 = dma.hbm_to_vmem [thread:$0]  (!%p1955_p8), %s212_s15, 1024, %s214_s19, [#allocation6], %s2341_s20, %s2341_s20, %s2342_s21  }
  0x11   : > { %s2440_s22 = sadd.s32 1, %s2335_s27   ;;  %s50_s24 = sadd.s32 1, %s2331_s26 }
  0x12   : > { %s47_s23 = ssub.s32 %s2335_s27, %s2440_s22  ;;  %p57_p10 = scmp.ne.s32.totalorder %s2331_s26, %s2327_s25 }
  0x13   : > { %p48_p9 = scmp.eq.s32.totalorder %s47_s23, 0  ;;  %p58_p11 = scmp.eq.s32.totalorder %s2335_s27, 0 }
  0x14   : > { %p1967_p13 = scmp.lt.s32.totalorder %s2335_s27, 2  ;;  %s253_s8 = sand.u32 1, %s2335_s27  }
  0x15   : > { %s2449_s30 = scalar_select %p48_p9, %s2331_s26, %s50_s24  }
  0x16   : > { %p59_p12 = por %p58_p11, %p57_p10  ;;  %s255_s9 = sand.u32 1, %s2331_s26  }
  0x17   : > { %s1791_s11 = sshll.u32 %s255_s9, 7  ;;  %s1897_s12 = sshll.u32 %s2335_s27, 7 }
  0x18   : > { %s263_s15 = scalar_lea.hbm %s2871_s1, %s1897_s12  ;;  %s257_s18 = scalar_lea.vmem [#allocation8], %s1791_s11 }
  0x19   : > { %s266_s19 = sshll.u32 %s257_s18, 4  ;;  %s264_s20 = sshll.u32 %s263_s15, 4  ;;  %s267_s19 = int_to_ptr.vmem [resolvable:$true] %s266_s19  ;;  %s265_s20 = int_to_ptr.hbm [resolvable:$true] %s264_s20 }
  0x1a   : > { %p2458_p0 = pnand %p1967_p13, %p59_p12  ;;  %s254_s23 = scalar_lea.sflag [#allocation9], %s253_s8 }
  0x1b   : > { %s2231_s24 = sshra.s32 %s265_s20, 4  ;;  %s2238_s11 = scalar_lea.hbm %s2871_s1, 256  ;;  %s2232_s24 = int_to_ptr.hbm [resolvable:$true] %s2231_s24 }
  0x1c   : > { %s2233_s16 = scalar_lea.hbm %s2232_s24, 128  ;;  %p2235_p3 = pneg %p2458_p0 }
  0x1d   : > { %p2234_p2 = scmp.ne.s32.totalorder %s2232_s24, %s2233_s16  ;;  %p2239_p9 = scmp.lt.s32.totalorder %s2232_s24, %s2871_s1 }
  0x1e   : > { %p2240_p10 = scmp.lt.s32.totalorder %s2238_s11, %s2233_s16 }
  0x1f   : > { %p2236_p7 = pnand %p2235_p3, %p2234_p2 }
  0x20   : > { %p2241_p11 = por %p2240_p10, %p2239_p9 }
  0x21   : > { %p2237_p8 = pneg %p2236_p7 }
  0x23   : > { %p2242_p12 = pnand %p2241_p11, %p2237_p8 }
  0x25   : > { %2245 = shalt.err (!%p2242_p12)
}
  0x26   : > { %s2882_s8 = smov 128   ;;  %278 = sbr.rel (%p2425_p6) target bundleno = 1838 (0x72e), region = 48 }
  0x27   : > { %1964 = dma.hbm_to_vmem [thread:$0]  (!%p2458_p0), %s265_s20, 2048, %s267_s19, %s254_s23, %s2882_s8, %s2882_s8, %s2339_s17  }
  0x2b   : > { %2306 = dma.done.wait (%p64_p1), [#allocation6], 1024  }
  0x2c   : > { %2308 = vsyncadd (%p64_p1), [#allocation6], 4294966272  ;;  %s285_s16 = sand.u32 1, %s2409_s28   ;;  %s287_s14 = sand.u32 1, %s2327_s25  }
  0x2d   : > { %s1797_s15 = sshll.u32 %s287_s14, 7  ;;  %s286_s18 = scalar_lea.sflag [#allocation9], %s285_s16 }
  0x2e   : > { %s2483_s21 = scalar_lea.vmem [#allocation8], %s1797_s15 }
  0x2f   : > { %2310 = dma.done.wait (%p2418_p5), %s286_s18, 2048  }
  0x30   : > { %2312 = vsyncadd (%p2418_p5), %s286_s18, 4294965248 }
  0x31   : > { %2314 = dma.done.wait (%p64_p1), [#allocation9], 256  }
  0x32   : > { %2316 = vsyncadd (%p64_p1), [#allocation9], 4294967040  ;;  %v322_v0 = vlaneseq  ;;  %v2343_v3 = vmov 0.0  }
  0x34   : > { %v323_v1 = vand.u32 127, %v322_v0 }
  0x35   : > { %334 = sbr.rel (%p1788_p4) target bundleno = 852 (0x354), region = 64 }
  0x36   : > { %v324_v2 = vadd.s32 128, %v323_v1 }
  0x38   : > { %vm326_vm0 = vcmp.lt.s32.totalorder %v324_v2, 200 }
  0x39   : > { %v2493_v4 = vsel %vm326_vm0, 1.0, %v2343_v3 }
  0x3a   : > { %v2497_v5 = vld [vmem:[#allocation5 + $0x30] sm:$0xff]  ;;  %v2499_v6 = vld [vmem:[#allocation5 + $0x38] sm:$0xff]  ;;  %v2513_v13 = vld [vmem:[#allocation5 + $0x28] sm:$0xff]  ;;  %vm467_vm9 = vcmask 261120  }
  0x3b   : > { %v2501_v7 = vld [vmem:[#allocation5 + $0x10] sm:$0xff]  ;;  %v349_v8 = vmul.f32 %v2497_v5, %v2497_v5  ;;  %v350_v9 = vmul.f32 %v2499_v6, %v2499_v6  ;;  %v2507_v10 = vld [vmem:[#allocation5 + $0x18] sm:$0xff]  ;;  %v348_v15 = vmul.f32 %v2513_v13, %v2513_v13  ;;  %v2518_v16 = vld [vmem:[#allocation5 + $0x8] sm:$0xff] }
  0x3c   : > { %v345_v11 = vmul.f32 %v2501_v7, %v2501_v7  ;;  %v346_v12 = vmul.f32 %v2507_v10, %v2507_v10  ;;  %v2521_v18 = vld [vmem:[#allocation5 + $0x20] sm:$0xff]  ;;  %v344_v19 = vmul.f32 %v2518_v16, %v2518_v16 }
  0x3d   : > { %v358_v14 = vmul.f32 %v2493_v4, %v350_v9  ;;  %v2525_v21 = vld [vmem:[#allocation5] sm:$0xff]  ;;  %v347_v23 = vmul.f32 %v2521_v18, %v2521_v18  ;;  %v356_v24 = vmul.f32 %v2493_v4, %v348_v15  ;;  %v429_v9 = vadd.f32 1e-05, %v2497_v5 }
  0x3e   : > { %v354_v17 = vmul.f32 %v2493_v4, %v346_v12  ;;  %v343_v25 = vmul.f32 %v2525_v21, %v2525_v21  ;;  %v352_v26 = vmul.f32 %v2493_v4, %v344_v19  ;;  %v430_v19 = vadd.f32 1e-05, %v2499_v6 }
  0x3f   : > { %v368_v20 = vadd.f32 %v358_v14, %v349_v8  ;;  %v365_v27 = vadd.f32 %v356_v24, %v347_v23  ;;  %v425_v23 = vadd.f32 1e-05, %v2501_v7  ;;  %v426_v24 = vadd.f32 1e-05, %v2507_v10 }
  0x40   : > { %v362_v22 = vadd.f32 %v354_v17, %v345_v11  ;;  %v359_v28 = vadd.f32 %v352_v26, %v343_v25  ;;  %v427_v10 = vadd.f32 1e-05, %v2521_v18 }
  0x41   : > { %369 = vadd.xlane.f32.xlu0 %v368_v20 }
  0x42   : > { %363 = vadd.xlane.f32.xlu1 %v362_v22 }
  0x49   : > { %366 = vadd.xlane.f32.xlu0 %v365_v27 }
  0x4a   : > { %360 = vadd.xlane.f32.xlu1 %v359_v28 }
  0xb4   : > { %v370_v29 = vpop.xlane.xlu0 %369 }
  0xb5   : > { %2020 = vrsqrt.f32 %v370_v29  ;;  %v364_v30 = vpop.xlane.xlu1 %363  ;;  %vm414_vm1 = vcmp.eq.f32.partialorder %v370_v29, inf  ;;  %v417_v51 = vand.u32 2147483648, %v370_v29  ;;  %vm416_vm2 = vcmp.eq.f32.partialorder %v370_v29, 0.0 }
  0xb6   : > { %2022 = vrsqrt.f32 %v364_v30  ;;  %vm390_vm3 = vcmp.eq.f32.partialorder %v364_v30, inf  ;;  %v393_v54 = vand.u32 2147483648, %v364_v30  ;;  %vm392_vm4 = vcmp.eq.f32.partialorder %v364_v30, 0.0 }
  0xbb   : > { %v2021_v31 = vpop.eup %2020 }
  0xbc   : > { %v2023_v32 = vpop.eup %2022  ;;  %v408_v33 = vmul.f32 %v2021_v31, %v370_v29  ;;  %v367_v34 = vpop.xlane.xlu0 %366 }
  0xbd   : > { %v384_v35 = vmul.f32 %v2023_v32, %v364_v30  ;;  %2024 = vrsqrt.f32 %v367_v34  ;;  %v361_v36 = vpop.xlane.xlu1 %360  ;;  %vm402_vm5 = vcmp.eq.f32.partialorder %v367_v34, inf  ;;  %v405_v12 = vand.u32 2147483648, %v367_v34 }
  0xbe   : > { %v409_v37 = vmul.f32 %v2021_v31, %v408_v33  ;;  %2026 = vrsqrt.f32 %v361_v36  ;;  %vm378_vm6 = vcmp.eq.f32.partialorder %v361_v36, inf  ;;  %v381_v15 = vand.u32 2147483648, %v361_v36 }
  0xbf   : > { %v385_v38 = vmul.f32 %v2023_v32, %v384_v35  ;;  %vm404_vm7 = vcmp.eq.f32.partialorder %v367_v34, 0.0  ;;  %vm380_vm8 = vcmp.eq.f32.partialorder %v361_v36, 0.0  ;;  %v428_v35 = vadd.f32 1e-05, %v2513_v13 }
  0xc0   : > { %v410_v39 = vmul.f32 0.5, %v409_v37  ;;  %v424_v37 = vadd.f32 1e-05, %v2518_v16  ;;  %v463_v16 = vld [vmem:[%s2872_s2] sm:$0xff] }
  0xc1   : > { %v386_v40 = vmul.f32 0.5, %v385_v38 }
  0xc2   : > { %v411_v41 = vsub.f32 1.5, %v410_v39 }
  0xc3   : > { %v2025_v42 = vpop.eup %2024  ;;  %v387_v43 = vsub.f32 1.5, %v386_v40 }
  0xc4   : > { %v2027_v44 = vpop.eup %2026  ;;  %v412_v45 = vmul.f32 %v2021_v31, %v411_v41  ;;  %v396_v46 = vmul.f32 %v2025_v42, %v367_v34 }
  0xc5   : > { %v388_v47 = vmul.f32 %v2023_v32, %v387_v43  ;;  %v372_v48 = vmul.f32 %v2027_v44, %v361_v36 }
  0xc6   : > { %v413_v49 = vmul.f32 %v412_v45, %v370_v29  ;;  %v397_v50 = vmul.f32 %v2025_v42, %v396_v46  ;;  %v466_v45 = vld [vmem:[%s2872_s2 + $0x18] sm:$0xff] }
  0xc7   : > { %v389_v52 = vmul.f32 %v388_v47, %v364_v30  ;;  %v373_v53 = vmul.f32 %v2027_v44, %v372_v48 }
  0xc8   : > { %v398_v55 = vmul.f32 0.5, %v397_v50  ;;  %v415_v56 = vsel %vm414_vm1, %v370_v29, %v413_v49 }
  0xc9   : > { %v374_v57 = vmul.f32 0.5, %v373_v53  ;;  %v418_v58 = vsel %vm416_vm2, %v417_v51, %v415_v56  ;;  %v391_v59 = vsel %vm390_vm3, %v364_v30, %v389_v52 }
  0xca   : > { %v399_v60 = vsub.f32 1.5, %v398_v55  ;;  %v422_v61 = vmin.f32 %v418_v58, 0.99999  ;;  %v394_v62 = vsel %vm392_vm4, %v393_v54, %v391_v59 }
  0xcb   : > { %v375_v63 = vsub.f32 1.5, %v374_v57  ;;  %v420_v0 = vmin.f32 %v394_v62, 0.99999 }
  0xcc   : > { %v400_v1 = vmul.f32 %v2025_v42, %v399_v60  ;;  %v434_v2 = vmul.f32 %v422_v61, %v418_v58 }
  0xcd   : > { %v376_v3 = vmul.f32 %v2027_v44, %v375_v63  ;;  %v432_v8 = vmul.f32 %v420_v0, %v394_v62  ;;  %v464_v44 = vld [vmem:[%s2872_s2 + $0x8] sm:$0xff] }
  0xce   : > { %v401_v11 = vmul.f32 %v400_v1, %v367_v34  ;;  %2028 = vrcp.f32 %v434_v2 }
  0xcf   : > { %v377_v14 = vmul.f32 %v376_v3, %v361_v36  ;;  %2030 = vrcp.f32 %v432_v8 }
  0xd0   : > { %v403_v17 = vsel %vm402_vm5, %v367_v34, %v401_v11 }
  0xd1   : > { %v406_v20 = vsel %vm404_vm7, %v405_v12, %v403_v17  ;;  %v379_v22 = vsel %vm378_vm6, %v361_v36, %v377_v14  ;;  %v423_v36 = vadd.f32 1e-05, %v2525_v21  ;;  %v465_v21 = vld [vmem:[%s2872_s2 + $0x10] sm:$0xff] }
  0xd2   : > { %v421_v5 = vmin.f32 %v406_v20, 0.99999  ;;  %v382_v25 = vsel %vm380_vm8, %v381_v15, %v379_v22 }
  0xd3   : > { %v419_v26 = vmin.f32 %v382_v25, 0.99999 }
  0xd4   : > { %v2029_v27 = vpop.eup %2028  ;;  %v433_v28 = vmul.f32 %v421_v5, %v406_v20 }
  0xd5   : > { %v2031_v29 = vpop.eup %2030  ;;  %v445_v30 = vmul.f32 %v2029_v27, %v429_v9  ;;  %v446_v31 = vmul.f32 %v2029_v27, %v430_v19  ;;  %v431_v32 = vmul.f32 %v419_v26, %v382_v25 }
  0xd6   : > { %2032 = vrcp.f32 %v433_v28  ;;  %v441_v33 = vmul.f32 %v2031_v29, %v425_v23  ;;  %v442_v34 = vmul.f32 %v2031_v29, %v426_v24 }
  0xd7   : > { %461 = vst [vmem:[#allocation2 + $0x28] sm:$0xff] %v445_v30  ;;  %492 = vmatpush.msra.mxu0 %v445_v30  ;;  %1916 = vmatpush.msra.mxu2 %v445_v30  ;;  %v454_v6 = vmul.f32 %v2493_v4, %v446_v31  ;;  %2034 = vrcp.f32 %v431_v32 }
  0xd8   : > { %457 = vst [vmem:[#allocation2 + $0x18] sm:$0xff] %v441_v33  ;;  %v450_v7 = vmul.f32 %v2493_v4, %v442_v34 }
  0xd9   : > { %462 = vst [vmem:[#allocation2 + $0x38] sm:$0xff] %v454_v6  ;;  %521 = vmatpush.msra.mxu1 %v454_v6  ;;  %1920 = vmatpush.msra.mxu3 %v454_v6 }
  0xda   : > { %458 = vst [vmem:[#allocation2 + $0x10] sm:$0xff] %v450_v7 }
  0xdc   : > { %v2033_v38 = vpop.eup %2032 }
  0xdd   : > { %v2035_v39 = vpop.eup %2034  ;;  %v443_v40 = vmul.f32 %v2033_v38, %v427_v10  ;;  %v444_v41 = vmul.f32 %v2033_v38, %v428_v35 }
  0xde   : > { %v439_v42 = vmul.f32 %v2035_v39, %v423_v36  ;;  %v440_v43 = vmul.f32 %v2035_v39, %v424_v37 }
  0xdf   : > { %459 = vst [vmem:[#allocation2 + $0x8] sm:$0xff] %v443_v40  ;;  %493 = vmatpush.msra.mxu0 %v443_v40  ;;  %1917 = vmatpush.msra.mxu2 %v443_v40  ;;  %v452_v18 = vmul.f32 %v2493_v4, %v444_v41 }
  0xe0   : > { %455 = vst [vmem:[#allocation2 + $0x30] sm:$0xff] %v439_v42  ;;  %v448_v13 = vmul.f32 %v2493_v4, %v440_v43 }
  0xe1   : > { %494 = vmatpush.msra.mxu0 %v441_v33  ;;  %1918 = vmatpush.msra.mxu2 %v441_v33  ;;  %460 = vst [vmem:[#allocation2 + $0x20] sm:$0xff] %v452_v18 }
  0xe2   : > { %522 = vmatpush.msra.mxu1 %v452_v18  ;;  %1921 = vmatpush.msra.mxu3 %v452_v18  ;;  %456 = vst [vmem:[#allocation2] sm:$0xff] %v448_v13 }
  0xe3   : > { %495 = vmatpush.msra.mxu0 %v439_v42  ;;  %1919 = vmatpush.msra.mxu2 %v439_v42 }
  0xe4   : > { %523 = vmatpush.msra.mxu1 %v450_v7  ;;  %1922 = vmatpush.msra.mxu3 %v450_v7 }
  0xe5   : > { %1801 = vmatmul.msk.f32.vlgmr.msra.gmra.mxu0 %vm467_vm9, %v463_v16  ;;  %1803 = vmatmul.msk.f32.vlgmr.msra.gmra.mxu2 %vm467_vm9, %v465_v21 }
  0xe6   : > { %524 = vmatpush.msra.mxu1 %v448_v13  ;;  %1923 = vmatpush.msra.mxu3 %v448_v13 }
  0xe7   : > { %1805 = vmatmul.msk.f32.vlgmr.msra.gmra.mxu1 %vm467_vm9, %v463_v16  ;;  %1807 = vmatmul.msk.f32.vlgmr.msra.gmra.mxu3 %vm467_vm9, %v465_v21 }
  0xed   : > { %1802 = vmatmul.msk.f32.gmra.mxu0 %vm467_vm9, %v464_v44  ;;  %1804 = vmatmul.msk.f32.gmra.mxu2 %vm467_vm9, %v466_v45 }
  0xef   : > { %1806 = vmatmul.msk.f32.gmra.mxu1 %vm467_vm9, %v464_v44  ;;  %1808 = vmatmul.msk.f32.gmra.mxu3 %vm467_vm9, %v466_v45 }
 0x162   : > { %v497_v46 = vpop.f32.mrf.mxu0 }
 0x163   : > { %v2557_v47 = vadd.f32 1e-05, %v497_v46 }
 0x164   : > { %v526_v48 = vpop.f32.mrf.mxu1 }
 0x165   : > { %v2559_v49 = vadd.f32 1e-05, %v526_v48  ;;  %v538_v50 = vmul.f32 %v2557_v47, %v2557_v47 }
 0x167   : > { %v539_v51 = vmul.f32 %v2559_v49, %v2559_v49 }
 0x168   : > { %v503_v52 = vpop.f32.mrf.mxu2 }
 0x169   : > { %v2565_v53 = vadd.f32 1e-05, %v503_v52  ;;  %v547_v54 = vmul.f32 %v2493_v4, %v539_v51 }
 0x16a   : > { %v532_v55 = vpop.f32.mrf.mxu3  ;;  %v500_v56 = vpop.f32.mrf.mxu0 }
 0x16b   : > { %v2568_v57 = vadd.f32 1e-05, %v532_v55  ;;  %v554_v58 = vadd.f32 %v547_v54, %v538_v50  ;;  %v2570_v59 = vadd.f32 1e-05, %v500_v56  ;;  %v542_v62 = vmul.f32 %v2565_v53, %v2565_v53 }
 0x16c   : > { %v529_v60 = vpop.f32.mrf.mxu1 }
 0x16d   : > { %v543_v61 = vmul.f32 %v2568_v57, %v2568_v57  ;;  %v2576_v63 = vadd.f32 1e-05, %v529_v60  ;;  %555 = vadd.xlane.f32.xlu2 %v554_v58  ;;  %v540_v2 = vmul.f32 %v2570_v59, %v2570_v59 }
 0x16f   : > { %v551_v0 = vmul.f32 %v2493_v4, %v543_v61  ;;  %v541_v1 = vmul.f32 %v2576_v63, %v2576_v63 }
 0x170   : > { %v506_v3 = vpop.f32.mrf.mxu2 }
 0x171   : > { %v549_v8 = vmul.f32 %v2493_v4, %v541_v1  ;;  %v560_v9 = vadd.f32 %v551_v0, %v542_v62  ;;  %v2584_v11 = vadd.f32 1e-05, %v506_v3 }
 0x172   : > { %v535_v12 = vpop.f32.mrf.mxu3 }
 0x173   : > { %v2586_v14 = vadd.f32 1e-05, %v535_v12  ;;  %561 = vadd.xlane.f32.xlu0 %v560_v9  ;;  %v557_v15 = vadd.f32 %v549_v8, %v540_v2  ;;  %v544_v19 = vmul.f32 %v2584_v11, %v2584_v11 }
 0x175   : > { %v545_v17 = vmul.f32 %v2586_v14, %v2586_v14  ;;  %558 = vadd.xlane.f32.xlu2 %v557_v15 }
 0x177   : > { %v553_v20 = vmul.f32 %v2493_v4, %v545_v17 }
 0x179   : > { %v563_v22 = vadd.f32 %v553_v20, %v544_v19 }
 0x17b   : > { %564 = vadd.xlane.f32.xlu1 %v563_v22 }
 0x1e0   : > { %v556_v23 = vpop.xlane.xlu2 %555 }
 0x1e1   : > { %2036 = vrsqrt.f32 %v556_v23  ;;  %vm573_vm10 = vcmp.eq.f32.partialorder %v556_v23, inf  ;;  %v576_v37 = vand.u32 2147483648, %v556_v23  ;;  %vm575_vm11 = vcmp.eq.f32.partialorder %v556_v23, 0.0 }
 0x1e6   : > { %v562_v24 = vpop.xlane.xlu0 %561 }
 0x1e7   : > { %v2037_v5 = vpop.eup %2036  ;;  %2038 = vrsqrt.f32 %v562_v24  ;;  %vm597_vm12 = vcmp.eq.f32.partialorder %v562_v24, inf  ;;  %vm599_vm13 = vcmp.eq.f32.partialorder %v562_v24, 0.0  ;;  %v600_v45 = vand.u32 2147483648, %v562_v24 }
 0x1e8   : > { %v567_v25 = vmul.f32 %v2037_v5, %v556_v23  ;;  %v559_v26 = vpop.xlane.xlu2 %558 }
 0x1e9   : > { %2040 = vrsqrt.f32 %v559_v26  ;;  %vm585_vm14 = vcmp.eq.f32.partialorder %v559_v26, inf  ;;  %v588_v51 = vand.u32 2147483648, %v559_v26  ;;  %vm587_vm15 = vcmp.eq.f32.partialorder %v559_v26, 0.0 }
 0x1ea   : > { %v568_v27 = vmul.f32 %v2037_v5, %v567_v25 }
 0x1ec   : > { %v569_v28 = vmul.f32 0.5, %v568_v27 }
 0x1ed   : > { %v2039_v29 = vpop.eup %2038 }
 0x1ee   : > { %v570_v30 = vsub.f32 1.5, %v569_v28  ;;  %v591_v31 = vmul.f32 %v2039_v29, %v562_v24  ;;  %v565_v32 = vpop.xlane.xlu1 %564 }
 0x1ef   : > { %v2041_v33 = vpop.eup %2040  ;;  %2042 = vrsqrt.f32 %v565_v32  ;;  %vm609_vm0 = vcmp.eq.f32.partialorder %v565_v32, inf  ;;  %v612_v1 = vand.u32 2147483648, %v565_v32  ;;  %vm611_vm1 = vcmp.eq.f32.partialorder %v565_v32, 0.0 }
 0x1f0   : > { %v571_v34 = vmul.f32 %v2037_v5, %v570_v30  ;;  %v592_v6 = vmul.f32 %v2039_v29, %v591_v31  ;;  %v579_v7 = vmul.f32 %v2041_v33, %v559_v26 }
 0x1f2   : > { %v572_v10 = vmul.f32 %v571_v34, %v556_v23  ;;  %v593_v35 = vmul.f32 0.5, %v592_v6  ;;  %v580_v36 = vmul.f32 %v2041_v33, %v579_v7 }
 0x1f4   : > { %v574_v38 = vsel %vm573_vm10, %v556_v23, %v572_v10  ;;  %v594_v39 = vsub.f32 1.5, %v593_v35  ;;  %v581_v40 = vmul.f32 0.5, %v580_v36 }
 0x1f5   : > { %v2043_v41 = vpop.eup %2042  ;;  %v577_v42 = vsel %vm575_vm11, %v576_v37, %v574_v38 }
 0x1f6   : > { %v595_v43 = vmul.f32 %v2039_v29, %v594_v39  ;;  %v582_v18 = vsub.f32 1.5, %v581_v40  ;;  %v603_v13 = vmul.f32 %v2043_v41, %v565_v32  ;;  %2044 = vtanh.f32 %v577_v42 }
 0x1f7   : > { %2046 = vrcp.f32 %v577_v42 }
 0x1f8   : > { %v596_v16 = vmul.f32 %v595_v43, %v562_v24  ;;  %v583_v21 = vmul.f32 %v2041_v33, %v582_v18  ;;  %v604_v44 = vmul.f32 %v2043_v41, %v603_v13 }
 0x1fa   : > { %v598_v46 = vsel %vm597_vm12, %v562_v24, %v596_v16  ;;  %v584_v48 = vmul.f32 %v583_v21, %v559_v26  ;;  %v605_v50 = vmul.f32 0.5, %v604_v44 }
 0x1fb   : > { %v601_v52 = vsel %vm599_vm13, %v600_v45, %v598_v46 }
 0x1fc   : > { %v2045_v54 = vpop.eup %2044  ;;  %v586_v55 = vsel %vm585_vm14, %v559_v26, %v584_v48  ;;  %v606_v56 = vsub.f32 1.5, %v605_v50  ;;  %2048 = vtanh.f32 %v601_v52 }
 0x1fd   : > { %v638_v58 = vadd.f32 1e-07, %v2045_v54  ;;  %v589_v60 = vsel %vm587_vm15, %v588_v51, %v586_v55  ;;  %v2047_v62 = vpop.eup %2046  ;;  %vm634_vm2 = vcmp.gt.f32.partialorder %v2045_v54, 0.99999 }
 0x1fe   : > { %v607_v61 = vmul.f32 %v2043_v41, %v606_v56  ;;  %2050 = vtanh.f32 %v589_v60  ;;  %v622_v8 = vmul.f32 %v2047_v62, %v2045_v54 }
 0x1ff   : > { %2052 = vrcp.f32 %v638_v58  ;;  %v2344_v58 = vmov 0  }
 0x200   : > { %v608_v0 = vmul.f32 %v607_v61, %v565_v32  ;;  %2054 = vrcp.f32 %v601_v52  ;;  %v627_v23 = vmul.f32 %v622_v8, %v2559_v49  ;;  %v626_v25 = vmul.f32 %v622_v8, %v2557_v47  ;;  %2017 = vset.pattern.permute.xlu0 %v2344_v58  ;;  %2018 = vset.pattern.permute.xlu1 %v2344_v58  ;;  %v668_v61 = vld [vmem:[%s2875_s5 + $0x10] sm:$0xff] }
 0x201   : > { %2056 = vrcp.f32 %v589_v60  ;;  %2019 = vset.pattern.permute.xlu2 %v2344_v58  ;;  %v2638_v8 = vadd.f32 1e-05, %v668_v61 }
 0x202   : > { %v2049_v2 = vpop.eup %2048  ;;  %v610_v3 = vsel %vm609_vm0, %v565_v32, %v608_v0 }
 0x203   : > { %v640_v9 = vadd.f32 1e-07, %v2049_v2  ;;  %v613_v12 = vsel %vm611_vm1, %v612_v1, %v610_v3  ;;  %vm636_vm3 = vcmp.gt.f32.partialorder %v2049_v2, 0.99999 }
 0x204   : > { %v2051_v15 = vpop.eup %2050  ;;  %2058 = vtanh.f32 %v613_v12 }
 0x205   : > { %v2053_v17 = vpop.eup %2052  ;;  %2060 = vrcp.f32 %v640_v9  ;;  %v639_v19 = vadd.f32 1e-07, %v2051_v15  ;;  %vm635_vm4 = vcmp.gt.f32.partialorder %v2051_v15, 0.99999 }
 0x206   : > { %v2055_v20 = vpop.eup %2054  ;;  %v646_v22 = vmul.f32 0.99999, %v2053_v17 }
 0x207   : > { %2062 = vrcp.f32 %v639_v19  ;;  %v2057_v24 = vpop.eup %2056  ;;  %v624_v28 = vmul.f32 %v2055_v20, %v2049_v2 }
 0x208   : > { %v650_v5 = vsel %vm634_vm2, %v646_v22, 1.0  ;;  %2064 = vrcp.f32 %v613_v12  ;;  %v623_v33 = vmul.f32 %v2057_v24, %v2051_v15  ;;  %v708_v22 = vmul.f32 %v2638_v8, %v2638_v8  ;;  %v669_v24 = vld [vmem:[%s2875_s5 + $0x18] sm:$0xff] }
 0x209   : > { %v2595_v26 = vmul.f32 %v650_v5, %v627_v23  ;;  %v662_v27 = vmul.f32 %v2045_v54, %v650_v5  ;;  %v2597_v31 = vmul.f32 %v650_v5, %v626_v25  ;;  %v631_v10 = vmul.f32 %v624_v28, %v2568_v57 }
 0x20a   : > { %v2059_v29 = vpop.eup %2058  ;;  %v630_v37 = vmul.f32 %v624_v28, %v2565_v53  ;;  %v629_v40 = vmul.f32 %v623_v33, %v2576_v63  ;;  %v628_v41 = vmul.f32 %v623_v33, %v2570_v59 }
 0x20b   : > { %v2061_v30 = vpop.eup %2060  ;;  %v679_v32 = vmul.f32 %v2493_v4, %v2595_v26  ;;  %v641_v49 = vadd.f32 1e-07, %v2059_v29  ;;  %vm637_vm5 = vcmp.gt.f32.partialorder %v2059_v29, 0.99999  ;;  %v670_v62 = vmul.f32 %v662_v27, %v662_v27 }
 0x20c   : > { %v648_v34 = vmul.f32 0.99999, %v2061_v30 }
 0x20d   : > { %v2063_v6 = vpop.eup %2062  ;;  %v686_v7 = vadd.f32 %v679_v32, %v2597_v31  ;;  %2066 = vrcp.f32 %v641_v49  ;;  %v2660_v32 = vadd.f32 1e-05, %v669_v24 }
 0x20e   : > { %v2065_v47 = vpop.eup %2064  ;;  %v652_v35 = vsel %vm636_vm3, %v648_v34, 1.0  ;;  %v647_v36 = vmul.f32 0.99999, %v2063_v6 }
 0x20f   : > { %687 = vadd.xlane.f32.xlu2 %v686_v7  ;;  %v2604_v38 = vmul.f32 %v652_v35, %v631_v10  ;;  %v664_v39 = vmul.f32 %v2049_v2, %v652_v35  ;;  %v2608_v43 = vmul.f32 %v652_v35, %v630_v37  ;;  %v625_v13 = vmul.f32 %v2065_v47, %v2059_v29  ;;  %v667_v2 = vld [vmem:[%s2875_s5 + $0x8] sm:$0xff] }
 0x210   : > { %v651_v42 = vsel %vm635_vm4, %v647_v36, 1.0  ;;  %v2641_v17 = vadd.f32 1e-05, %v667_v2  ;;  %v701_v47 = vmul.f32 2.0, %v2660_v32 }
 0x211   : > { %v683_v57 = vmul.f32 %v2493_v4, %v2604_v38  ;;  %v2612_v18 = vmul.f32 %v651_v42, %v629_v40  ;;  %v663_v16 = vmul.f32 %v2051_v15, %v651_v42  ;;  %v2615_v44 = vmul.f32 %v651_v42, %v628_v41 }
 0x212   : > { %v633_v46 = vmul.f32 %v625_v13, %v2586_v14  ;;  %v632_v50 = vmul.f32 %v625_v13, %v2584_v11  ;;  %v666_v14 = vld [vmem:[%s2875_s5] sm:$0xff]  ;;  %v700_v15 = vmul.f32 2.0, %v2638_v8  ;;  %v2643_v19 = vmul.f32 %v664_v39, %v664_v39 }
 0x213   : > { %v2067_v21 = vpop.eup %2066  ;;  %v692_v53 = vadd.f32 %v683_v57, %v2608_v43  ;;  %v681_v63 = vmul.f32 %v2493_v4, %v2612_v18  ;;  %v674_v11 = vadd.f32 1e-05, %v666_v14  ;;  %v699_v23 = vmul.f32 2.0, %v2641_v17 }
 0x214   : > { %v649_v45 = vmul.f32 0.99999, %v2067_v21  ;;  %v2653_v25 = vmul.f32 %v663_v16, %v663_v16  ;;  %v716_v33 = vmul.f32 %v708_v22, %v2643_v19  ;;  %v709_v39 = vmul.f32 %v2660_v32, %v2660_v32 }
 0x215   : > { %693 = vadd.xlane.f32.xlu1 %v692_v53  ;;  %v689_v59 = vadd.f32 %v681_v63, %v2615_v44  ;;  %v698_v60 = vmul.f32 2.0, %v674_v11  ;;  %v706_v0 = vmul.f32 %v674_v11, %v674_v11  ;;  %v738_v40 = vsub.f32 1.0, %v670_v62 }
 0x216   : > { %v653_v48 = vsel %vm637_vm5, %v649_v45, 1.0 }
 0x217   : > { %690 = vadd.xlane.f32.xlu0 %v689_v59  ;;  %v2622_v51 = vmul.f32 %v653_v48, %v633_v46  ;;  %v665_v52 = vmul.f32 %v2059_v29, %v653_v48  ;;  %v2624_v54 = vmul.f32 %v653_v48, %v632_v50  ;;  %v714_v9 = vmul.f32 %v706_v0, %v670_v62 }
 0x218   : > { %v707_v29 = vmul.f32 %v2641_v17, %v2641_v17 }
 0x219   : > { %v685_v55 = vmul.f32 %v2493_v4, %v2622_v51  ;;  %v2666_v35 = vmul.f32 %v665_v52, %v665_v52 }
 0x21a   : > { %v715_v7 = vmul.f32 %v707_v29, %v2653_v25 }
 0x21b   : > { %v695_v56 = vadd.f32 %v685_v55, %v2624_v54  ;;  %v717_v63 = vmul.f32 %v709_v39, %v2666_v35 }
 0x21d   : > { %696 = vadd.xlane.f32.xlu2 %v695_v56  ;;  %v740_v56 = vsub.f32 1.0, %v2643_v19 }
 0x282   : > { %v688_v1 = vpop.xlane.xlu2 %687 }
 0x283   : > { %v702_v3 = vmul.f32 %v698_v60, %v688_v1 }
 0x285   : > { %v710_v12 = vadd.f32 1.0, %v702_v3 }
 0x287   : > { %v718_v20 = vadd.f32 %v714_v9, %v710_v12  ;;  %v730_v41 = vadd.f32 %v710_v12, %v706_v0 }
 0x288   : > { %v2651_v5 = vpop.xlane.xlu1 %693 }
 0x289   : > { %v722_v27 = vadd.f32 1e-05, %v718_v20  ;;  %v704_v28 = vmul.f32 %v700_v15, %v2651_v5 }
 0x28a   : > { %v2658_v30 = vpop.xlane.xlu0 %690 }
 0x28b   : > { %2068 = vrcp.f32 %v722_v27  ;;  %v712_v49 = vadd.f32 1.0, %v704_v28  ;;  %v703_v34 = vmul.f32 %v699_v23, %v2658_v30 }
 0x28d   : > { %v720_v6 = vadd.f32 %v716_v33, %v712_v49  ;;  %v711_v10 = vadd.f32 1.0, %v703_v34  ;;  %v732_v58 = vadd.f32 %v712_v49, %v708_v22 }
 0x28f   : > { %v724_v36 = vadd.f32 1e-05, %v720_v6  ;;  %v719_v37 = vadd.f32 %v715_v7, %v711_v10  ;;  %v731_v15 = vadd.f32 %v711_v10, %v707_v29  ;;  %v741_v7 = vsub.f32 1.0, %v2666_v35 }
 0x290   : > { %v2670_v42 = vpop.xlane.xlu2 %696 }
 0x291   : > { %v2069_v57 = vpop.eup %2068  ;;  %2070 = vrcp.f32 %v724_v36  ;;  %v723_v13 = vadd.f32 1e-05, %v719_v37  ;;  %v705_v16 = vmul.f32 %v701_v47, %v2670_v42 }
 0x292   : > { %v734_v21 = vmul.f32 %v2069_v57, %v730_v41  ;;  %v742_v53 = vmul.f32 %v2069_v57, %v738_v40 }
 0x293   : > { %2072 = vrcp.f32 %v723_v13  ;;  %v713_v45 = vadd.f32 1.0, %v705_v16 }
 0x294   : > { %v746_v59 = vmul.f32 %v742_v53, %v674_v11  ;;  %v806_v46 = vmul.f32 %v734_v21, %v734_v21  ;;  %v814_v48 = vmul.f32 2.0, %v734_v21  ;;  %752 = vperm.xlu0 %2017, %v734_v21   ;;  %v739_v11 = vsub.f32 1.0, %v2653_v25 }
 0x295   : > { %v721_v50 = vadd.f32 %v717_v63, %v713_v45 }
 0x296   : > { %v818_v52 = vmul.f32 %v814_v48, %v746_v59  ;;  %v830_v55 = vmul.f32 %v746_v59, %v746_v59  ;;  %780 = vperm.xlu1 %2018, %v746_v59   ;;  %v810_v61 = vmul.f32 %v806_v46, %v670_v62 }
 0x297   : > { %v2071_v14 = vpop.eup %2070  ;;  %v725_v60 = vadd.f32 1e-05, %v721_v50 }
 0x298   : > { %v822_v0 = vmul.f32 %v818_v52, %v688_v1  ;;  %v736_v2 = vmul.f32 %v2071_v14, %v732_v58  ;;  %v744_v3 = vmul.f32 %v2071_v14, %v740_v56  ;;  %v834_v12 = vmul.f32 200.0, %v830_v55 }
 0x299   : > { %v2073_v9 = vpop.eup %2072  ;;  %2074 = vrcp.f32 %v725_v60 }
 0x29a   : > { %v826_v20 = vadd.f32 %v822_v0, %v810_v61  ;;  %v748_v23 = vmul.f32 %v744_v3, %v2638_v8  ;;  %v808_v24 = vmul.f32 %v736_v2, %v736_v2  ;;  %v816_v27 = vmul.f32 2.0, %v736_v2  ;;  %762 = vperm.xlu2 %2019, %v736_v2  }
 0x29b   : > { %v735_v22 = vmul.f32 %v2073_v9, %v731_v15  ;;  %v743_v28 = vmul.f32 %v2073_v9, %v739_v11  ;;  %v733_v8 = vadd.f32 %v713_v45, %v709_v39 }
 0x29c   : > { %v2677_v33 = vadd.f32 %v834_v12, %v826_v20  ;;  %v820_v62 = vmul.f32 %v816_v27, %v748_v23  ;;  %v832_v1 = vmul.f32 %v748_v23, %v748_v23  ;;  %v812_v29 = vmul.f32 %v808_v24, %v2643_v19 }
 0x29d   : > { %v747_v49 = vmul.f32 %v743_v28, %v2641_v17  ;;  %v807_v34 = vmul.f32 %v735_v22, %v735_v22  ;;  %v815_v6 = vmul.f32 2.0, %v735_v22 }
 0x29e   : > { %v824_v10 = vmul.f32 %v820_v62, %v2651_v5  ;;  %757 = vperm.xlu1 %2018, %v735_v22   ;;  %2076 = vrsqrt.f32 %v2677_v33  ;;  %v836_v41 = vmul.f32 200.0, %v832_v1  ;;  %vm849_vm6 = vcmp.eq.f32.partialorder %v2677_v33, inf }
 0x29f   : > { %v2075_v47 = vpop.eup %2074  ;;  %v819_v36 = vmul.f32 %v815_v6, %v747_v49  ;;  %v831_v37 = vmul.f32 %v747_v49, %v747_v49  ;;  %v811_v17 = vmul.f32 %v807_v34, %v2653_v25  ;;  %vm851_vm7 = vcmp.eq.f32.partialorder %v2677_v33, 0.0 }
 0x2a0   : > { %v828_v40 = vadd.f32 %v824_v10, %v812_v29  ;;  %v737_v57 = vmul.f32 %v2075_v47, %v733_v8  ;;  %v745_v13 = vmul.f32 %v2075_v47, %v741_v7 }
 0x2a1   : > { %v823_v16 = vmul.f32 %v819_v36, %v2658_v30  ;;  %v835_v63 = vmul.f32 200.0, %v831_v37 }
 0x2a2   : > { %v840_v21 = vadd.f32 %v836_v41, %v828_v40  ;;  %v749_v19 = vmul.f32 %v745_v13, %v2660_v32  ;;  %v809_v53 = vmul.f32 %v737_v57, %v737_v57  ;;  %v817_v5 = vmul.f32 2.0, %v737_v57  ;;  %785 = vperm.xlu2 %2019, %v747_v49  }
 0x2a3   : > { %v827_v39 = vadd.f32 %v823_v16, %v811_v17 }
 0x2a4   : > { %v2077_v45 = vpop.eup %2076  ;;  %v821_v59 = vmul.f32 %v817_v5, %v749_v19  ;;  %v833_v46 = vmul.f32 %v749_v19, %v749_v19  ;;  %795 = vperm.xlu0 %2017, %v749_v19   ;;  %2078 = vrsqrt.f32 %v840_v21  ;;  %v813_v25 = vmul.f32 %v809_v53, %v2666_v35 }
 0x2a5   : > { %v839_v48 = vadd.f32 %v835_v63, %v827_v39  ;;  %v843_v50 = vmul.f32 %v2077_v45, %v2677_v33  ;;  %vm873_vm8 = vcmp.eq.f32.partialorder %v840_v21, inf  ;;  %v876_v6 = vand.u32 2147483648, %v840_v21 }
 0x2a6   : > { %v825_v30 = vmul.f32 %v821_v59, %v2670_v42  ;;  %790 = vperm.xlu1 %2018, %v748_v23   ;;  %v837_v55 = vmul.f32 200.0, %v833_v46  ;;  %v852_v42 = vand.u32 2147483648, %v2677_v33  ;;  %vm875_vm9 = vcmp.eq.f32.partialorder %v840_v21, 0.0 }
 0x2a7   : > { %v844_v52 = vmul.f32 %v2077_v45, %v843_v50  ;;  %2080 = vrsqrt.f32 %v839_v48  ;;  %vm861_vm10 = vcmp.eq.f32.partialorder %v839_v48, inf  ;;  %v864_v36 = vand.u32 2147483648, %v839_v48 }
 0x2a8   : > { %v829_v32 = vadd.f32 %v825_v30, %v813_v25  ;;  %vm863_vm11 = vcmp.eq.f32.partialorder %v839_v48, 0.0 }
 0x2a9   : > { %v845_v56 = vmul.f32 0.5, %v844_v52 }
 0x2aa   : > { %v2079_v58 = vpop.eup %2078  ;;  %v841_v14 = vadd.f32 %v837_v55, %v829_v32  ;;  %767 = vperm.xlu2 %2019, %v737_v57  }
 0x2ab   : > { %v846_v60 = vsub.f32 1.5, %v845_v56  ;;  %v867_v61 = vmul.f32 %v2079_v58, %v840_v21 }
 0x2ac   : > { %2082 = vrsqrt.f32 %v841_v14  ;;  %vm885_vm13 = vcmp.eq.f32.partialorder %v841_v14, inf  ;;  %vm887_vm14 = vcmp.eq.f32.partialorder %v841_v14, 0.0 }
 0x2ad   : > { %v2081_v0 = vpop.eup %2080  ;;  %v847_v2 = vmul.f32 %v2077_v45, %v846_v60  ;;  %v868_v3 = vmul.f32 %v2079_v58, %v867_v61 }
 0x2ae   : > { %v855_v9 = vmul.f32 %v2081_v0, %v839_v48 }
 0x2af   : > { %v848_v35 = vmul.f32 %v847_v2, %v2677_v33  ;;  %v869_v12 = vmul.f32 0.5, %v868_v3 }
 0x2b0   : > { %v856_v11 = vmul.f32 %v2081_v0, %v855_v9 }
 0x2b1   : > { %v850_v15 = vsel %vm849_vm6, %v2677_v33, %v848_v35  ;;  %v870_v20 = vsub.f32 1.5, %v869_v12 }
 0x2b2   : > { %v2083_v23 = vpop.eup %2082  ;;  %v853_v24 = vsel %vm851_vm7, %v852_v42, %v850_v15  ;;  %v857_v27 = vmul.f32 0.5, %v856_v11 }
 0x2b3   : > { %v894_v22 = vadd.f32 1e-07, %v853_v24  ;;  %v871_v28 = vmul.f32 %v2079_v58, %v870_v20  ;;  %v879_v62 = vmul.f32 %v2083_v23, %v841_v14  ;;  %vm890_vm12 = vcmp.gt.f32.partialorder %v853_v24, 0.99999 }
 0x2b4   : > { %v858_v1 = vsub.f32 1.5, %v857_v27 }
 0x2b5   : > { %2084 = vrcp.f32 %v894_v22  ;;  %v872_v49 = vmul.f32 %v871_v28, %v840_v21  ;;  %v880_v34 = vmul.f32 %v2083_v23, %v879_v62 }
 0x2b6   : > { %v859_v7 = vmul.f32 %v2081_v0, %v858_v1 }
 0x2b7   : > { %v874_v29 = vsel %vm873_vm8, %v840_v21, %v872_v49  ;;  %v881_v10 = vmul.f32 0.5, %v880_v34  ;;  %v888_v21 = vand.u32 2147483648, %v841_v14 }
 0x2b8   : > { %v877_v8 = vsel %vm875_vm9, %v876_v6, %v874_v29  ;;  %v860_v47 = vmul.f32 %v859_v7, %v839_v48 }
 0x2b9   : > { %v896_v33 = vadd.f32 1e-07, %v877_v8  ;;  %v882_v37 = vsub.f32 1.5, %v881_v10  ;;  %vm892_vm15 = vcmp.gt.f32.partialorder %v877_v8, 0.99999  ;;  %v2345_v10 = vmov 0.0  }
 0x2ba   : > { %v862_v40 = vsel %vm861_vm10, %v839_v48, %v860_v47  ;;  %1006 = vst [vmem:[#allocation4] sm:$0xff] %v2345_v10 }
 0x2bb   : > { %v2085_v41 = vpop.eup %2084  ;;  %2086 = vrcp.f32 %v896_v33  ;;  %v865_v57 = vsel %vm863_vm11, %v864_v36, %v862_v40  ;;  %v883_v13 = vmul.f32 %v2083_v23, %v882_v37  ;;  %1007 = vst [vmem:[#allocation4 + $0x18] sm:$0xff] %v2345_v10 }
 0x2bc   : > { %v902_v17 = vmul.f32 0.99999, %v2085_v41  ;;  %v895_v16 = vadd.f32 1e-07, %v865_v57  ;;  %vm891_vm0 = vcmp.gt.f32.partialorder %v865_v57, 0.99999 }
 0x2bd   : > { %v884_v19 = vmul.f32 %v883_v13, %v841_v14  ;;  %1008 = vst [vmem:[#allocation4 + $0x10] sm:$0xff] %v2345_v10 }
 0x2be   : > { %v906_v53 = vsel %vm890_vm12, %v902_v17, 1.0  ;;  %2088 = vrcp.f32 %v895_v16  ;;  %1009 = vst [vmem:[#allocation4 + $0x20] sm:$0xff] %v2345_v10 }
 0x2bf   : > { %v938_v5 = vmul.f32 %v906_v53, %v853_v24  ;;  %912 = vperm.xlu2 %2019, %v906_v53   ;;  %v886_v39 = vsel %vm885_vm13, %v841_v14, %v884_v19  ;;  %1010 = vst [vmem:[#allocation4 + $0x28] sm:$0xff] %v2345_v10 }
 0x2c0   : > { %v889_v63 = vsel %vm887_vm14, %v888_v21, %v886_v39  ;;  %1011 = vst [vmem:[#allocation4 + $0x8] sm:$0xff] %v2345_v10 }
 0x2c1   : > { %v2087_v45 = vpop.eup %2086  ;;  %v942_v59 = vmin.f32 %v938_v5, 0.99999  ;;  %v897_v46 = vadd.f32 1e-07, %v889_v63  ;;  %vm893_vm1 = vcmp.gt.f32.partialorder %v889_v63, 0.99999 }
 0x2c2   : > { %v904_v48 = vmul.f32 0.99999, %v2087_v45  ;;  %1012 = vst [vmem:[#allocation4 + $0x30] sm:$0xff] %v2345_v10 }
 0x2c3   : > { %2090 = vrcp.f32 %v897_v46  ;;  %v954_v30 = vmul.f32 %v942_v59, %v938_v5  ;;  %1013 = vst [vmem:[#allocation4 + $0x38] sm:$0xff] %v2345_v10 }
 0x2c4   : > { %v2089_v50 = vpop.eup %2088  ;;  %v908_v25 = vsel %vm892_vm15, %v904_v48, 1.0 }
 0x2c5   : > { %v940_v52 = vmul.f32 %v908_v25, %v877_v8  ;;  %922 = vperm.xlu0 %2017, %v908_v25   ;;  %v903_v32 = vmul.f32 0.99999, %v2089_v50  ;;  %2092 = vrcp.f32 %v954_v30 }
 0x2c7   : > { %v944_v55 = vmin.f32 %v940_v52, 0.99999  ;;  %v907_v56 = vsel %vm891_vm0, %v903_v32, 1.0 }
 0x2c8   : > { %v939_v58 = vmul.f32 %v907_v56, %v865_v57  ;;  %917 = vperm.xlu1 %2018, %v907_v56  }
 0x2c9   : > { %v2091_v60 = vpop.eup %2090  ;;  %v956_v14 = vmul.f32 %v944_v55, %v940_v52 }
 0x2ca   : > { %v943_v61 = vmin.f32 %v939_v58, 0.99999  ;;  %v905_v0 = vmul.f32 0.99999, %v2091_v60 }
 0x2cb   : > { %2094 = vrcp.f32 %v956_v14  ;;  %v2093_v35 = vpop.eup %2092 }
 0x2cc   : > { %v955_v2 = vmul.f32 %v943_v61, %v939_v58  ;;  %v909_v3 = vsel %vm893_vm1, %v905_v0, 1.0 }
 0x2cd   : > { %927 = vperm.xlu2 %2019, %v909_v3   ;;  %v941_v9 = vmul.f32 %v909_v3, %v889_v63 }
 0x2ce   : > { %2096 = vrcp.f32 %v955_v2 }
 0x2cf   : > { %v945_v12 = vmin.f32 %v941_v9, 0.99999 }
 0x2d0   : > { %964 = vperm.xlu1 %2018, %v2093_v35  }
 0x2d1   : > { %v957_v42 = vmul.f32 %v945_v12, %v941_v9  ;;  %v2095_v11 = vpop.eup %2094 }
 0x2d3   : > { %2098 = vrcp.f32 %v957_v42 }
 0x2d4   : > { %v2097_v15 = vpop.eup %2096 }
 0x2d5   : > { %969 = vperm.xlu0 %2017, %v2097_v15   ;;  %974 = vperm.xlu2 %2019, %v2095_v11  }
 0x2d9   : > { %v2099_v20 = vpop.eup %2098 }
 0x2da   : > { %979 = vperm.xlu1 %2018, %v2099_v20  }
 0x2f4   : > { %v763_v23 = vpop.permute.xlu2 %762 }
 0x2f5   : > { %v774_v7 = vmul.f32 %v763_v23, %v2608_v43  ;;  %v775_v29 = vmul.f32 %v763_v23, %v2604_v38 }
 0x2fc   : > { %v786_v24 = vpop.permute.xlu2 %785 }
 0x304   : > { %v768_v22 = vpop.permute.xlu2 %767 }
 0x305   : > { %v777_v25 = vmul.f32 %v768_v22, %v2622_v51  ;;  %v776_v32 = vmul.f32 %v768_v22, %v2624_v54 }
 0x306   : > { %v753_v28 = vpop.permute.xlu0 %752 }
 0x307   : > { %v771_v33 = vmul.f32 %v753_v28, %v2595_v26  ;;  %v770_v41 = vmul.f32 %v753_v28, %v2597_v31 }
 0x308   : > { %v781_v27 = vpop.permute.xlu1 %780 }
 0x309   : > { %v799_v38 = vadd.f32 %v781_v27, %v771_v33  ;;  %v798_v53 = vadd.f32 %v781_v27, %v770_v41 }
 0x310   : > { %v758_v62 = vpop.permute.xlu1 %757 }
 0x311   : > { %v773_v16 = vmul.f32 %v758_v62, %v2612_v18  ;;  %v772_v21 = vmul.f32 %v758_v62, %v2615_v44 }
 0x313   : > { %v801_v45 = vadd.f32 %v786_v24, %v773_v16  ;;  %v800_v46 = vadd.f32 %v786_v24, %v772_v21 }
 0x316   : > { %v796_v49 = vpop.permute.xlu0 %795 }
 0x317   : > { %v805_v55 = vadd.f32 %v796_v49, %v777_v25  ;;  %v804_v60 = vadd.f32 %v796_v49, %v776_v32 }
 0x318   : > { %v791_v6 = vpop.permute.xlu1 %790 }
 0x319   : > { %v913_v1 = vpop.permute.xlu2 %912  ;;  %v802_v8 = vadd.f32 %v791_v6, %v774_v7  ;;  %v803_v47 = vadd.f32 %v791_v6, %v775_v29 }
 0x31a   : > { %v931_v26 = vmul.f32 %v913_v1, %v799_v38  ;;  %v930_v63 = vmul.f32 %v913_v1, %v798_v53 }
 0x31c   : > { %v947_v59 = vadd.f32 1e-05, %v931_v26  ;;  %v946_v30 = vadd.f32 1e-05, %v930_v63 }
 0x327   : > { %v928_v34 = vpop.permute.xlu2 %927 }
 0x328   : > { %v937_v14 = vmul.f32 %v928_v34, %v805_v55  ;;  %v936_v9 = vmul.f32 %v928_v34, %v804_v60 }
 0x32a   : > { %v953_v12 = vadd.f32 1e-05, %v937_v14  ;;  %v952_v54 = vadd.f32 1e-05, %v936_v9 }
 0x32f   : > { %v975_v17 = vpop.permute.xlu2 %974 }
 0x337   : > { %v923_v36 = vpop.permute.xlu0 %922 }
 0x338   : > { %v934_v37 = vmul.f32 %v923_v36, %v802_v8  ;;  %v935_v40 = vmul.f32 %v923_v36, %v803_v47 }
 0x33a   : > { %v950_v57 = vadd.f32 1e-05, %v934_v37  ;;  %v951_v43 = vadd.f32 1e-05, %v935_v40  ;;  %v918_v13 = vpop.permute.xlu1 %917 }
 0x33b   : > { %v933_v48 = vmul.f32 %v918_v13, %v801_v45  ;;  %v932_v52 = vmul.f32 %v918_v13, %v800_v46 }
 0x33c   : > { %v987_v19 = vmul.f32 %v975_v17, %v951_v43  ;;  %v986_v5 = vmul.f32 %v975_v17, %v950_v57 }
 0x33d   : > { %v949_v58 = vadd.f32 1e-05, %v933_v48  ;;  %v948_v2 = vadd.f32 1e-05, %v932_v52 }
 0x33e   : > { %v995_v39 = vmul.f32 %v2493_v4, %v987_v19 }
 0x340   : > { %v1000_v31 = vpack.c.bf16 %v995_v39, %v986_v5 }
 0x342   : > { %1004 = vst [vmem:[#allocation3 + $0x10] sm:$0xff] %v1000_v31  ;;  %v965_v50 = vpop.permute.xlu1 %964 }
 0x343   : > { %v983_v18 = vmul.f32 %v965_v50, %v947_v59  ;;  %v982_v44 = vmul.f32 %v965_v50, %v946_v30 }
 0x345   : > { %v991_v56 = vmul.f32 %v2493_v4, %v983_v18 }
 0x347   : > { %v998_v61 = vpack.c.bf16 %v991_v56, %v982_v44  ;;  %v970_v0 = vpop.permute.xlu0 %969 }
 0x348   : > { %v985_v3 = vmul.f32 %v970_v0, %v949_v58  ;;  %v984_v35 = vmul.f32 %v970_v0, %v948_v2 }
 0x349   : > { %1002 = vst [vmem:[#allocation3] sm:$0xff] %v998_v61 }
 0x34a   : > { %v993_v51 = vmul.f32 %v2493_v4, %v985_v3 }
 0x34c   : > { %v999_v42 = vpack.c.bf16 %v993_v51, %v984_v35  ;;  %v980_v11 = vpop.permute.xlu1 %979 }
 0x34d   : > { %v989_v15 = vmul.f32 %v980_v11, %v953_v12  ;;  %v988_v20 = vmul.f32 %v980_v11, %v952_v54 }
 0x34e   : > { %1003 = vst [vmem:[#allocation3 + $0x8] sm:$0xff] %v999_v42 }
 0x34f   : > { %v997_v23 = vmul.f32 %v2493_v4, %v989_v15 }
 0x351   : > { %v1001_v24 = vpack.c.bf16 %v997_v23, %v988_v20 }
 0x353   : > { %1005 = vst [vmem:[#allocation3 + $0x18] sm:$0xff] %v1001_v24 }
 0x354 PF: > { %v1877_v27 = vld [vmem:[%s2483_s21 + $0x70] sm:$0xf]  ;;  %v1915_v22 = vld [vmem:[%s2483_s21 + $0x74] sm:$0xf0]  ;;  %v1914_v28 = vld [vmem:[%s2483_s21 + $0x74] sm:$0xf] }
 0x355   : > { %v1878_v62 = vor.u32 %v1915_v22, %v1877_v27  ;;  %v1879_v1 = vld [vmem:[%s2483_s21 + $0x78] sm:$0xf0]  ;;  %v1869_v49 = vld [vmem:[%s2483_s21 + $0x60] sm:$0xf]  ;;  %v1913_v34 = vld [vmem:[%s2483_s21 + $0x64] sm:$0xf0] }
 0x356   : > { %v1882_v6 = vor.u32 %v1914_v28, %v1879_v1  ;;  %v1912_v7 = vld [vmem:[%s2483_s21 + $0x64] sm:$0xf]  ;;  %v1871_v29 = vld [vmem:[%s2483_s21 + $0x68] sm:$0xf0]  ;;  %v1870_v10 = vor.u32 %v1913_v34, %v1869_v49  ;;  %v1861_v47 = vld [vmem:[%s2483_s21 + $0x50] sm:$0xf] }
 0x357   : > { %1139 = vmatpush.bf16.msra.mxu0 %v1878_v62  ;;  %1924 = vmatpush.bf16.msra.mxu2 %v1878_v62  ;;  %v1874_v8 = vor.u32 %v1912_v7, %v1871_v29  ;;  %v1911_v33 = vld [vmem:[%s2483_s21 + $0x54] sm:$0xf0]  ;;  %v1910_v36 = vld [vmem:[%s2483_s21 + $0x54] sm:$0xf]  ;;  %v1863_v37 = vld [vmem:[%s2483_s21 + $0x58] sm:$0xf0] }
 0x358   : > { %1158 = vmatpush.bf16.msra.mxu1 %v1882_v6  ;;  %1932 = vmatpush.bf16.msra.mxu3 %v1882_v6  ;;  %v1862_v40 = vor.u32 %v1911_v33, %v1861_v47  ;;  %v1866_v41 = vor.u32 %v1910_v36, %v1863_v37  ;;  %v1853_v57 = vld [vmem:[%s2483_s21 + $0x40] sm:$0xf]  ;;  %v1909_v43 = vld [vmem:[%s2483_s21 + $0x44] sm:$0xf0]  ;;  %v1908_v13 = vld [vmem:[%s2483_s21 + $0x44] sm:$0xf] }
 0x359   : > { %v1855_v38 = vld [vmem:[%s2483_s21 + $0x48] sm:$0xf0]  ;;  %v1854_v17 = vor.u32 %v1909_v43, %v1853_v57  ;;  %v1845_v19 = vld [vmem:[%s2483_s21 + $0x30] sm:$0xf]  ;;  %v1907_v53 = vld [vmem:[%s2483_s21 + $0x34] sm:$0xf0] }
 0x35a   : > { %v1858_v16 = vor.u32 %v1908_v13, %v1855_v38  ;;  %v1906_v26 = vld [vmem:[%s2483_s21 + $0x34] sm:$0xf]  ;;  %v1847_v21 = vld [vmem:[%s2483_s21 + $0x38] sm:$0xf0]  ;;  %s1809_s18 = sshll.u32 %s2409_s28, 7  ;;  %v1846_v5 = vor.u32 %v1907_v53, %v1845_v19  ;;  %v1015_v51 = vld [vmem:[#allocation4] sm:$0xff] }
 0x35b   : > { %1140 = vmatpush.bf16.msra.mxu0 %v1870_v10  ;;  %1925 = vmatpush.bf16.msra.mxu2 %v1870_v10  ;;  %v1850_v39 = vor.u32 %v1906_v26, %v1847_v21  ;;  %v1837_v63 = vld [vmem:[%s2483_s21 + $0x20] sm:$0xf]  ;;  %v1905_v31 = vld [vmem:[%s2483_s21 + $0x24] sm:$0xf0]  ;;  %v1904_v45 = vld [vmem:[%s2483_s21 + $0x24] sm:$0xf] }
 0x35c   : > { %1159 = vmatpush.bf16.msra.mxu1 %v1874_v8  ;;  %1933 = vmatpush.bf16.msra.mxu3 %v1874_v8  ;;  %v1839_v59 = vld [vmem:[%s2483_s21 + $0x28] sm:$0xf0]  ;;  %s1023_s29 = sshra.s32 %s1809_s18, 7  ;;  %v1838_v46 = vor.u32 %v1905_v31, %v1837_v63  ;;  %v1829_v50 = vld [vmem:[%s2483_s21 + $0x10] sm:$0xf]  ;;  %v1016_v12 = vld [vmem:[#allocation4 + $0x18] sm:$0xff] }
 0x35d   : > { %v1842_v48 = vor.u32 %v1904_v45, %v1839_v59  ;;  %v1903_v25 = vld [vmem:[%s2483_s21 + $0x14] sm:$0xf0]  ;;  %s1810_s10 = sshll.u32 %s1023_s29, 2  ;;  %v1902_v30 = vld [vmem:[%s2483_s21 + $0x14] sm:$0xf]  ;;  %v1019_v20 = vld [vmem:[#allocation4 + $0x28] sm:$0xff] }
 0x35e   : > { %v1831_v18 = vld [vmem:[%s2483_s21 + $0x18] sm:$0xf0]  ;;  %v1830_v52 = vor.u32 %v1903_v25, %v1829_v50  ;;  %v1821_v55 = vld [vmem:[%s2483_s21] sm:$0xf]  ;;  %v1901_v44 = vld [vmem:[%s2483_s21 + $0x4] sm:$0xf0] }
 0x35f   : > { %1141 = vmatpush.bf16.msra.mxu0 %v1862_v40  ;;  %1926 = vmatpush.bf16.msra.mxu2 %v1862_v40  ;;  %v1834_v32 = vor.u32 %v1902_v30, %v1831_v18  ;;  %v1900_v56 = vld [vmem:[%s2483_s21 + $0x4] sm:$0xf]  ;;  %v1823_v58 = vld [vmem:[%s2483_s21 + $0x8] sm:$0xf0]  ;;  %s1026_s17 = scalar_lea.vmem [#allocation3], %s1810_s10  ;;  %v1822_v14 = vor.u32 %v1901_v44, %v1821_v55  ;;  %v1017_v27 = vld [vmem:[#allocation4 + $0x10] sm:$0xff] }
 0x360   : > { %1160 = vmatpush.bf16.msra.mxu1 %v1866_v41  ;;  %1934 = vmatpush.bf16.msra.mxu3 %v1866_v41  ;;  %v1813_v60 = vld [vmem:[%s1026_s17] sm:$0xf]  ;;  %v1898_v61 = vld [vmem:[%s1026_s17 + $0x4] sm:$0xf0]  ;;  %v1817_v0 = vld [vmem:[%s1026_s17 + $0x10] sm:$0xf]  ;;  %v1826_v3 = vor.u32 %v1900_v56, %v1823_v58 }
 0x361   : > { %v1899_v2 = vld [vmem:[%s1026_s17 + $0x14] sm:$0xf0]  ;;  %v1814_v9 = vor.u32 %v1898_v61, %v1813_v60  ;;  %v1020_v23 = vld [vmem:[#allocation4 + $0x8] sm:$0xff]  ;;  %v1018_v62 = vld [vmem:[#allocation4 + $0x20] sm:$0xff]  ;;  %p1883_p1 = scmp.ne.s32.totalorder %s2409_s28, 1 }
 0x362   : > { %v1818_v35 = vor.u32 %v1899_v2, %v1817_v0  ;;  %v1021_v29 = vld [vmem:[#allocation4 + $0x30] sm:$0xff]  ;;  %v1022_v10 = vld [vmem:[#allocation4 + $0x38] sm:$0xff] }
 0x363   : > { %1142 = vmatpush.bf16.msra.mxu0 %v1854_v17  ;;  %1927 = vmatpush.bf16.msra.mxu2 %v1854_v17 }
 0x364   : > { %1161 = vmatpush.bf16.msra.mxu1 %v1858_v16  ;;  %1935 = vmatpush.bf16.msra.mxu3 %v1858_v16 }
 0x367   : > { %1143 = vmatpush.bf16.msra.mxu0 %v1846_v5  ;;  %1928 = vmatpush.bf16.msra.mxu2 %v1846_v5 }
 0x368   : > { %1162 = vmatpush.bf16.msra.mxu1 %v1850_v39  ;;  %1936 = vmatpush.bf16.msra.mxu3 %v1850_v39 }
 0x36b   : > { %1144 = vmatpush.bf16.msra.mxu0 %v1838_v46  ;;  %1929 = vmatpush.bf16.msra.mxu2 %v1838_v46 }
 0x36c   : > { %1163 = vmatpush.bf16.msra.mxu1 %v1842_v48  ;;  %1937 = vmatpush.bf16.msra.mxu3 %v1842_v48 }
 0x36f   : > { %1145 = vmatpush.bf16.msra.mxu0 %v1830_v52  ;;  %1930 = vmatpush.bf16.msra.mxu2 %v1830_v52 }
 0x370   : > { %1164 = vmatpush.bf16.msra.mxu1 %v1834_v32  ;;  %1938 = vmatpush.bf16.msra.mxu3 %v1834_v32 }
 0x373   : > { %1146 = vmatpush.bf16.msra.mxu0 %v1822_v14  ;;  %1931 = vmatpush.bf16.msra.mxu2 %v1822_v14 }
 0x374   : > { %1165 = vmatpush.bf16.msra.mxu1 %v1826_v3  ;;  %1939 = vmatpush.bf16.msra.mxu3 %v1826_v3 }
 0x376   : > { %1147 = vmatmul.bf16.vlgmr.msra.gmra.mxu0 %v1814_v9  ;;  %1152 = vmatmul.bf16.vlgmr.msra.gmra.mxu2 %v1818_v35 }
 0x377   : > { %1166 = vmatmul.bf16.vlgmr.msra.gmra.mxu1 %v1814_v9  ;;  %1171 = vmatmul.bf16.vlgmr.msra.gmra.mxu3 %v1818_v35 }
 0x3f3   : > { %v1148_v42 = vpop.f32.mrf.mxu0 }
 0x3f4   : > { %v1177_v11 = vadd.f32 %v1148_v42, %v1015_v51  ;;  %v1167_v54 = vpop.f32.mrf.mxu1 }
 0x3f5   : > { %v1178_v15 = vadd.f32 %v1167_v54, %v1016_v12 }
 0x3f6   : > { %1185 = vst [vmem:[#allocation4] sm:$0xff] %v1177_v11 }
 0x3f7   : > { %1186 = vst [vmem:[#allocation4 + $0x18] sm:$0xff] %v1178_v15 }
 0x3f9   : > { %v1153_v24 = vpop.f32.mrf.mxu2 }
 0x3fa   : > { %v1181_v22 = vadd.f32 %v1153_v24, %v1019_v20  ;;  %v1172_v28 = vpop.f32.mrf.mxu3 }
 0x3fb   : > { %v1182_v1 = vadd.f32 %v1172_v28, %v1020_v23  ;;  %v1150_v49 = vpop.f32.mrf.mxu0 }
 0x3fc   : > { %1189 = vst [vmem:[#allocation4 + $0x28] sm:$0xff] %v1181_v22  ;;  %v1179_v34 = vadd.f32 %v1150_v49, %v1017_v27  ;;  %v1169_v6 = vpop.f32.mrf.mxu1 }
 0x3fd   : > { %1190 = vst [vmem:[#allocation4 + $0x8] sm:$0xff] %v1182_v1  ;;  %v1180_v7 = vadd.f32 %v1169_v6, %v1018_v62 }
 0x3fe   : > { %1187 = vst [vmem:[#allocation4 + $0x10] sm:$0xff] %v1179_v34 }
 0x3ff   : > { %1188 = vst [vmem:[#allocation4 + $0x20] sm:$0xff] %v1180_v7 }
 0x401   : > { %v1155_v8 = vpop.f32.mrf.mxu2  ;;  %1196 = sbr.rel (%p1883_p1) target bundleno = 1832 (0x728), region = 68 }
 0x402   : > { %v1183_v47 = vadd.f32 %v1155_v8, %v1021_v29  ;;  %v1174_v33 = vpop.f32.mrf.mxu3 }
 0x403   : > { %v1184_v36 = vadd.f32 %v1174_v33, %v1022_v10 }
 0x404   : > { %1191 = vst [vmem:[#allocation4 + $0x30] sm:$0xff] %v1183_v47 }
 0x405   : > { %1192 = vst [vmem:[#allocation4 + $0x38] sm:$0xff] %v1184_v36 }
 0x406   : > { %v1199_v41 = vld [vmem:[#allocation4 + $0x10] sm:$0xff]  ;;  %v1200_v13 = vld [vmem:[#allocation4 + $0x20] sm:$0xff]  ;;  %v1201_v16 = vld [vmem:[#allocation4 + $0x28] sm:$0xff]  ;;  %vm1389_vm10 = vcmask 261120  }
 0x407   : > { %v2745_v38 = vadd.f32 1e-05, %v1199_v41  ;;  %v2747_v17 = vadd.f32 1e-05, %v1200_v13  ;;  %v1202_v19 = vld [vmem:[#allocation4 + $0x8] sm:$0xff]  ;;  %v1197_v5 = vld [vmem:[#allocation4] sm:$0xff] }
 0x408   : > { %v2753_v21 = vadd.f32 1e-05, %v1202_v19  ;;  %v1198_v39 = vld [vmem:[#allocation4 + $0x18] sm:$0xff]  ;;  %v2762_v46 = vadd.f32 1e-05, %v1201_v16 }
 0x409   : > { %v1215_v63 = vmul.f32 %v2745_v38, %v2745_v38  ;;  %v1216_v31 = vmul.f32 %v2747_v17, %v2747_v17  ;;  %v2759_v45 = vadd.f32 1e-05, %v1198_v39  ;;  %v2767_v25 = vadd.f32 1e-05, %v1197_v5  ;;  %v1384_v5 = vld [vmem:[#allocation2 + $0x20] sm:$0xff] }
 0x40a   : > { %v1218_v48 = vmul.f32 %v2753_v21, %v2753_v21  ;;  %v1217_v32 = vmul.f32 %v2762_v46, %v2762_v46 }
 0x40b   : > { %v1203_v37 = vld [vmem:[#allocation4 + $0x30] sm:$0xff]  ;;  %v1224_v50 = vmul.f32 %v2493_v4, %v1216_v31  ;;  %v1214_v30 = vmul.f32 %v2759_v45, %v2759_v45  ;;  %v1213_v44 = vmul.f32 %v2767_v25, %v2767_v25  ;;  %v1383_v31 = vld [vmem:[#allocation2 + $0x8] sm:$0xff] }
 0x40c   : > { %v1204_v40 = vld [vmem:[#allocation4 + $0x38] sm:$0xff]  ;;  %v2741_v57 = vadd.f32 1e-05, %v1203_v37  ;;  %v1226_v55 = vmul.f32 %v2493_v4, %v1218_v48 }
 0x40d   : > { %v2743_v43 = vadd.f32 1e-05, %v1204_v40  ;;  %v1232_v52 = vadd.f32 %v1224_v50, %v1215_v63  ;;  %v1222_v56 = vmul.f32 %v2493_v4, %v1214_v30  ;;  %v1382_v50 = vld [vmem:[#allocation2 + $0x10] sm:$0xff] }
 0x40e   : > { %v1219_v53 = vmul.f32 %v2741_v57, %v2741_v57  ;;  %v1235_v58 = vadd.f32 %v1226_v55, %v1217_v32 }
 0x40f   : > { %v1220_v26 = vmul.f32 %v2743_v43, %v2743_v43  ;;  %1233 = vadd.xlane.f32.xlu1 %v1232_v52  ;;  %v1229_v60 = vadd.f32 %v1222_v56, %v1213_v44  ;;  %v1381_v56 = vld [vmem:[#allocation2 + $0x18] sm:$0xff] }
 0x411   : > { %v1228_v59 = vmul.f32 %v2493_v4, %v1220_v26  ;;  %v1385_v26 = vld [vmem:[#allocation2 + $0x28] sm:$0xff] }
 0x412   : > { %1460 = vmatpush.msra.mxu2 %v1385_v26 }
 0x413   : > { %v1238_v18 = vadd.f32 %v1228_v59, %v1219_v53  ;;  %v1386_v53 = vld [vmem:[#allocation2 + $0x38] sm:$0xff] }
 0x414   : > { %1483 = vmatpush.msra.mxu3 %v1386_v53  ;;  %1461 = vmatpush.msra.mxu2 %v1383_v31 }
 0x415   : > { %1239 = vadd.xlane.f32.xlu0 %v1238_v18 }
 0x416   : > { %1484 = vmatpush.msra.mxu3 %v1384_v5  ;;  %1462 = vmatpush.msra.mxu2 %v1381_v56 }
 0x417   : > { %1230 = vadd.xlane.f32.xlu1 %v1229_v60  ;;  %v1377_v60 = vld [vmem:[%s2873_s3] sm:$0xff] }
 0x418   : > { %1485 = vmatpush.msra.mxu3 %v1382_v50 }
 0x41d   : > { %1236 = vadd.xlane.f32.xlu0 %v1235_v58  ;;  %v1380_v58 = vld [vmem:[#allocation2] sm:$0xff] }
 0x41e   : > { %1486 = vmatpush.msra.mxu3 %v1380_v58 }
 0x41f   : > { %1890 = vmatmul.msk.f32.vlgmr.msra.gmra.mxu3 %vm1389_vm10, %v1377_v60 }
 0x482   : > { %v1234_v61 = vpop.xlane.xlu1 %1233 }
 0x483   : > { %vm1260_vm4 = vcmp.eq.f32.partialorder %v1234_v61, inf  ;;  %v1263_v10 = vand.u32 2147483648, %v1234_v61  ;;  %vm1262_vm5 = vcmp.eq.f32.partialorder %v1234_v61, 0.0 }
 0x488   : > { %v1240_v14 = vpop.xlane.xlu0 %1239 }
 0x489   : > { %2103 = vrsqrt.f32 %v1240_v14  ;;  %vm1284_vm2 = vcmp.eq.f32.partialorder %v1240_v14, inf  ;;  %vm1286_vm3 = vcmp.eq.f32.partialorder %v1240_v14, 0.0  ;;  %v1287_v34 = vand.u32 2147483648, %v1240_v14 }
 0x48a   : > { %2105 = vrsqrt.f32 %v1234_v61  ;;  %v2777_v51 = vpop.xlane.xlu1 %1230 }
 0x48b   : > { %vm1248_vm8 = vcmp.eq.f32.partialorder %v2777_v51, inf  ;;  %v1251_v55 = vand.u32 2147483648, %v2777_v51  ;;  %vm1250_vm9 = vcmp.eq.f32.partialorder %v2777_v51, 0.0 }
 0x48f   : > { %v2104_v0 = vpop.eup %2103 }
 0x490   : > { %v2106_v2 = vpop.eup %2105  ;;  %v1278_v3 = vmul.f32 %v2104_v0, %v1240_v14  ;;  %v1237_v9 = vpop.xlane.xlu0 %1236 }
 0x491   : > { %v1254_v35 = vmul.f32 %v2106_v2, %v1234_v61  ;;  %2107 = vrsqrt.f32 %v1237_v9  ;;  %vm1272_vm6 = vcmp.eq.f32.partialorder %v1237_v9, inf  ;;  %v1275_v39 = vand.u32 2147483648, %v1237_v9 }
 0x492   : > { %v1279_v12 = vmul.f32 %v2104_v0, %v1278_v3  ;;  %2109 = vrsqrt.f32 %v2777_v51  ;;  %vm1274_vm7 = vcmp.eq.f32.partialorder %v1237_v9, 0.0 }
 0x493   : > { %v1255_v42 = vmul.f32 %v2106_v2, %v1254_v35 }
 0x494   : > { %v1280_v11 = vmul.f32 0.5, %v1279_v12 }
 0x495   : > { %v1256_v54 = vmul.f32 0.5, %v1255_v42 }
 0x496   : > { %v1281_v15 = vsub.f32 1.5, %v1280_v11 }
 0x497   : > { %v2108_v20 = vpop.eup %2107  ;;  %v1257_v23 = vsub.f32 1.5, %v1256_v54 }
 0x498   : > { %v2110_v24 = vpop.eup %2109  ;;  %v1282_v27 = vmul.f32 %v2104_v0, %v1281_v15  ;;  %v1266_v22 = vmul.f32 %v2108_v20, %v1237_v9 }
 0x499   : > { %v1258_v28 = vmul.f32 %v2106_v2, %v1257_v23  ;;  %v1242_v62 = vmul.f32 %v2110_v24, %v2777_v51  ;;  %v1378_v23 = vld [vmem:[%s2873_s3 + $0x8] sm:$0xff] }
 0x49a   : > { %v1283_v1 = vmul.f32 %v1282_v27, %v1240_v14  ;;  %v1267_v49 = vmul.f32 %v2108_v20, %v1266_v22  ;;  %1891 = vmatmul.msk.f32.gmra.mxu3 %vm1389_vm10, %v1378_v23 }
 0x49b   : > { %v1259_v6 = vmul.f32 %v1258_v28, %v1234_v61  ;;  %v1243_v7 = vmul.f32 %v2110_v24, %v1242_v62 }
 0x49c   : > { %v1285_v29 = vsel %vm1284_vm2, %v1240_v14, %v1283_v1  ;;  %v1268_v8 = vmul.f32 0.5, %v1267_v49 }
 0x49d   : > { %v1261_v47 = vsel %vm1260_vm4, %v1234_v61, %v1259_v6  ;;  %v1244_v33 = vmul.f32 0.5, %v1243_v7  ;;  %v1288_v36 = vsel %vm1286_vm3, %v1287_v34, %v1285_v29  ;;  %v1379_v61 = vld [vmem:[#allocation2 + $0x30] sm:$0xff] }
 0x49e   : > { %v1269_v37 = vsub.f32 1.5, %v1268_v8  ;;  %2111 = vtanh.f32 %v1288_v36  ;;  %v1264_v40 = vsel %vm1262_vm5, %v1263_v10, %v1261_v47  ;;  %1463 = vmatpush.msra.mxu2 %v1379_v61 }
 0x49f   : > { %v1245_v41 = vsub.f32 1.5, %v1244_v33  ;;  %2113 = vtanh.f32 %v1264_v40  ;;  %1888 = vmatmul.msk.f32.vlgmr.msra.gmra.mxu2 %vm1389_vm10, %v1377_v60 }
 0x4a0   : > { %v1270_v13 = vmul.f32 %v2108_v20, %v1269_v37 }
 0x4a1   : > { %v1246_v16 = vmul.f32 %v2110_v24, %v1245_v41 }
 0x4a2   : > { %v1271_v19 = vmul.f32 %v1270_v13, %v1237_v9 }
 0x4a3   : > { %v1247_v63 = vmul.f32 %v1246_v16, %v2777_v51 }
 0x4a4   : > { %v2112_v59 = vpop.eup %2111  ;;  %v1273_v48 = vsel %vm1272_vm6, %v1237_v9, %v1271_v19 }
 0x4a5   : > { %v1249_v30 = vsel %vm1248_vm8, %v2777_v51, %v1247_v63  ;;  %v1316_v18 = vadd.f32 1e-07, %v2112_v59  ;;  %v1276_v52 = vsel %vm1274_vm7, %v1275_v39, %v1273_v48  ;;  %v2114_v32 = vpop.eup %2113  ;;  %vm1312_vm11 = vcmp.gt.f32.partialorder %v2112_v59, 0.99999 }
 0x4a6   : > { %2115 = vtanh.f32 %v1276_v52  ;;  %v1314_v44 = vadd.f32 1e-07, %v2114_v32  ;;  %v1252_v14 = vsel %vm1250_vm9, %v1251_v55, %v1249_v30  ;;  %vm1310_vm12 = vcmp.gt.f32.partialorder %v2114_v32, 0.99999 }
 0x4a7   : > { %2117 = vrcp.f32 %v1316_v18  ;;  %1889 = vmatmul.msk.f32.gmra.mxu2 %vm1389_vm10, %v1378_v23 }
 0x4a8   : > { %2119 = vrcp.f32 %v1288_v36 }
 0x4a9   : > { %2121 = vrcp.f32 %v1314_v44 }
 0x4aa   : > { %2123 = vtanh.f32 %v1252_v14 }
 0x4ab   : > { %2125 = vrcp.f32 %v1264_v40 }
 0x4ac   : > { %v2116_v0 = vpop.eup %2115 }
 0x4ad   : > { %v2118_v2 = vpop.eup %2117  ;;  %v1315_v3 = vadd.f32 1e-07, %v2116_v0  ;;  %vm1311_vm13 = vcmp.gt.f32.partialorder %v2116_v0, 0.99999 }
 0x4ae   : > { %v2120_v9 = vpop.eup %2119  ;;  %v1324_v35 = vmul.f32 0.99999, %v2118_v2 }
 0x4af   : > { %v2122_v51 = vpop.eup %2121  ;;  %2127 = vrcp.f32 %v1315_v3  ;;  %v1300_v54 = vmul.f32 %v2120_v9, %v2112_v59 }
 0x4b0   : > { %v1328_v12 = vsel %vm1312_vm11, %v1324_v35, 1.0  ;;  %2129 = vrcp.f32 %v1276_v52  ;;  %v1322_v42 = vmul.f32 0.99999, %v2122_v51  ;;  %v2124_v11 = vpop.eup %2123 }
 0x4b1   : > { %v1340_v15 = vmul.f32 %v2112_v59, %v1328_v12  ;;  %v2126_v27 = vpop.eup %2125  ;;  %v1313_v28 = vadd.f32 1e-07, %v2124_v11  ;;  %v1307_v1 = vmul.f32 %v1300_v54, %v2741_v57  ;;  %v1308_v6 = vmul.f32 %v1300_v54, %v2743_v43 }
 0x4b2   : > { %v1326_v20 = vsel %vm1310_vm12, %v1322_v42, 1.0  ;;  %v1298_v10 = vmul.f32 %v2126_v27, %v2114_v32  ;;  %vm1309_vm14 = vcmp.gt.f32.partialorder %v2124_v11, 0.99999  ;;  %v1387_v27 = vld [vmem:[#allocation10] sm:$0xff] }
 0x4b3   : > { %v1344_v24 = vmin.f32 %v1340_v15, 0.99999  ;;  %v1338_v22 = vmul.f32 %v2114_v32, %v1326_v20  ;;  %2131 = vrcp.f32 %v1313_v28  ;;  %v1335_v8 = vmul.f32 %v1328_v12, %v1307_v1 }
 0x4b4   : > { %v1336_v47 = vmul.f32 %v1328_v12, %v1308_v6  ;;  %v1304_v19 = vmul.f32 %v1298_v10, %v2747_v17  ;;  %v1303_v48 = vmul.f32 %v1298_v10, %v2745_v38 }
 0x4b5   : > { %v2128_v62 = vpop.eup %2127  ;;  %v1356_v49 = vmul.f32 %v1344_v24, %v1340_v15  ;;  %v1342_v29 = vmin.f32 %v1338_v22, 0.99999  ;;  %v1351_v57 = vadd.f32 1e-05, %v1335_v8 }
 0x4b6   : > { %v2130_v34 = vpop.eup %2129  ;;  %v1323_v7 = vmul.f32 0.99999, %v2128_v62  ;;  %v1352_v16 = vadd.f32 1e-05, %v1336_v47  ;;  %v1332_v30 = vmul.f32 %v1326_v20, %v1304_v19  ;;  %v1331_v32 = vmul.f32 %v1326_v20, %v1303_v48  ;;  %v1488_v62 = vpop.f32.mrf.mxu3 }
 0x4b7   : > { %2133 = vrcp.f32 %v1356_v49  ;;  %v1299_v36 = vmul.f32 %v2130_v34, %v2116_v0  ;;  %v1354_v40 = vmul.f32 %v1342_v29, %v1338_v22  ;;  %v1388_v22 = vld [vmem:[#allocation10 + $0x8] sm:$0xff] }
 0x4b8   : > { %v1327_v33 = vsel %vm1311_vm13, %v1323_v7, 1.0  ;;  %2135 = vrcp.f32 %v1252_v14  ;;  %v1348_v14 = vadd.f32 1e-05, %v1332_v30 }
 0x4b9   : > { %v1339_v37 = vmul.f32 %v2116_v0, %v1327_v33  ;;  %v2132_v13 = vpop.eup %2131  ;;  %v1305_v53 = vmul.f32 %v1299_v36, %v2762_v46  ;;  %2137 = vrcp.f32 %v1354_v40  ;;  %v1306_v59 = vmul.f32 %v1299_v36, %v2753_v21 }
 0x4ba   : > { %v1321_v5 = vmul.f32 0.99999, %v2132_v13  ;;  %v1347_v0 = vadd.f32 1e-05, %v1331_v32 }
 0x4bb   : > { %v1343_v41 = vmin.f32 %v1339_v37, 0.99999  ;;  %v1333_v18 = vmul.f32 %v1327_v33, %v1305_v53  ;;  %v1334_v52 = vmul.f32 %v1327_v33, %v1306_v59 }
 0x4bc   : > { %v1325_v50 = vsel %vm1309_vm14, %v1321_v5, 1.0 }
 0x4bd   : > { %v2134_v43 = vpop.eup %2133  ;;  %v1355_v26 = vmul.f32 %v1343_v41, %v1339_v37  ;;  %v1337_v46 = vmul.f32 %v2124_v11, %v1325_v50  ;;  %v1349_v58 = vadd.f32 1e-05, %v1333_v18  ;;  %v1350_v60 = vadd.f32 1e-05, %v1334_v52 }
 0x4be   : > { %v2136_v39 = vpop.eup %2135  ;;  %v1367_v63 = vmul.f32 %v2134_v43, %v1351_v57  ;;  %v1368_v31 = vmul.f32 %v2134_v43, %v1352_v16 }
 0x4bf   : > { %2139 = vrcp.f32 %v1355_v26  ;;  %v1297_v55 = vmul.f32 %v2136_v39, %v2124_v11  ;;  %v1341_v44 = vmin.f32 %v1337_v46, 0.99999  ;;  %v2138_v56 = vpop.eup %2137 }
 0x4c0   : > { %1408 = vmatpush.msra.mxu0 %v1367_v63  ;;  %v1376_v17 = vmul.f32 %v2493_v4, %v1368_v31  ;;  %v1364_v35 = vmul.f32 %v2138_v56, %v1348_v14  ;;  %v1363_v42 = vmul.f32 %v2138_v56, %v1347_v0 }
 0x4c1   : > { %v1353_v21 = vmul.f32 %v1341_v44, %v1337_v46  ;;  %v1301_v38 = vmul.f32 %v1297_v55, %v2767_v25  ;;  %v1302_v2 = vmul.f32 %v1297_v55, %v2759_v45 }
 0x4c2   : > { %1431 = vmatpush.msra.mxu1 %v1376_v17  ;;  %v1372_v54 = vmul.f32 %v2493_v4, %v1364_v35 }
 0x4c3   : > { %2141 = vrcp.f32 %v1353_v21  ;;  %v1329_v51 = vmul.f32 %v1325_v50, %v1301_v38  ;;  %v1330_v12 = vmul.f32 %v1325_v50, %v1302_v2 }
 0x4c5   : > { %v2140_v61 = vpop.eup %2139  ;;  %v1345_v15 = vadd.f32 1e-05, %v1329_v51  ;;  %v1346_v20 = vadd.f32 1e-05, %v1330_v12 }
 0x4c6   : > { %v1365_v3 = vmul.f32 %v2140_v61, %v1349_v58  ;;  %v1366_v9 = vmul.f32 %v2140_v61, %v1350_v60 }
 0x4c8   : > { %1409 = vmatpush.msra.mxu0 %v1365_v3  ;;  %v1374_v11 = vmul.f32 %v2493_v4, %v1366_v9 }
 0x4c9   : > { %v2142_v23 = vpop.eup %2141 }
 0x4ca   : > { %1410 = vmatpush.msra.mxu0 %v1363_v42  ;;  %1432 = vmatpush.msra.mxu1 %v1374_v11  ;;  %v1361_v25 = vmul.f32 %v2142_v23, %v1345_v15  ;;  %v1362_v45 = vmul.f32 %v2142_v23, %v1346_v20 }
 0x4cc   : > { %1433 = vmatpush.msra.mxu1 %v1372_v54  ;;  %1411 = vmatpush.msra.mxu0 %v1361_v25  ;;  %v1370_v24 = vmul.f32 %v2493_v4, %v1362_v45 }
 0x4cd   : > { %1884 = vmatmul.msk.f32.vlgmr.msra.gmra.mxu0 %vm1389_vm10, %v1387_v27 }
 0x4ce   : > { %1434 = vmatpush.msra.mxu1 %v1370_v24 }
 0x4cf   : > { %1886 = vmatmul.msk.f32.vlgmr.msra.gmra.mxu1 %vm1389_vm10, %v1387_v27 }
 0x4d5   : > { %1885 = vmatmul.msk.f32.gmra.mxu0 %vm1389_vm10, %v1388_v22 }
 0x4d7   : > { %1887 = vmatmul.msk.f32.gmra.mxu1 %vm1389_vm10, %v1388_v22 }
 0x51d   : > { %v1491_v33 = vpop.f32.mrf.mxu3 }
 0x522   : > { %v1465_v28 = vpop.f32.mrf.mxu2 }
 0x52a   : > { %v1468_v10 = vpop.f32.mrf.mxu2 }
 0x54a   : > { %v1413_v1 = vpop.f32.mrf.mxu0 }
 0x54b   : > { %v1466_v49 = vadd.f32 %v1465_v28, %v1413_v1 }
 0x54c   : > { %v1436_v34 = vpop.f32.mrf.mxu1 }
 0x54d   : > { %v1489_v6 = vadd.f32 %v1488_v62, %v1436_v34  ;;  %v2812_v7 = vadd.f32 1e-05, %v1466_v49 }
 0x54f   : > { %v1495_v29 = vadd.f32 1e-05, %v1489_v6  ;;  %v1498_v8 = vmul.f32 %v2812_v7, %v2812_v7 }
 0x551   : > { %v1499_v47 = vmul.f32 %v1495_v29, %v1495_v29 }
 0x552   : > { %v1416_v36 = vpop.f32.mrf.mxu0 }
 0x553   : > { %v1469_v37 = vadd.f32 %v1468_v10, %v1416_v36  ;;  %v1503_v40 = vmul.f32 %v2493_v4, %v1499_v47  ;;  %v1562_v36 = vld [vmem:[%s2876_s6] sm:$0xff] }
 0x554   : > { %v1439_v41 = vpop.f32.mrf.mxu1 }
 0x555   : > { %v1492_v13 = vadd.f32 %v1491_v33, %v1439_v41  ;;  %v2817_v57 = vadd.f32 1e-05, %v1469_v37  ;;  %v1506_v16 = vadd.f32 %v1503_v40, %v1498_v8  ;;  %v2346_v33 = vmov 0  }
 0x556   : > { %2100 = vset.pattern.permute.xlu2 %v2346_v33  ;;  %2102 = vset.pattern.permute.xlu1 %v2346_v33  ;;  %v1566_v37 = vadd.f32 1e-05, %v1562_v36 }
 0x557   : > { %v2819_v19 = vadd.f32 1e-05, %v1492_v13  ;;  %1507 = vadd.xlane.f32.xlu2 %v1506_v16  ;;  %v1500_v53 = vmul.f32 %v2817_v57, %v2817_v57  ;;  %2101 = vset.pattern.permute.xlu0 %v2346_v33 }
 0x558   : > { %v1578_v40 = vmul.f32 2.0, %v1566_v37  ;;  %v1582_v13 = vmul.f32 %v1566_v37, %v1566_v37 }
 0x559   : > { %v1501_v43 = vmul.f32 %v2819_v19, %v2819_v19 }
 0x55b   : > { %v1505_v26 = vmul.f32 %v2493_v4, %v1501_v43 }
 0x55d   : > { %v1509_v5 = vadd.f32 %v1505_v26, %v1500_v53 }
 0x55f   : > { %1510 = vadd.xlane.f32.xlu2 %v1509_v5 }
 0x5ca   : > { %v1508_v39 = vpop.xlane.xlu2 %1507 }
 0x5cb   : > { %2143 = vrsqrt.f32 %v1508_v39  ;;  %vm1519_vm15 = vcmp.eq.f32.partialorder %v1508_v39, inf  ;;  %v1522_v55 = vand.u32 2147483648, %v1508_v39  ;;  %vm1521_vm0 = vcmp.eq.f32.partialorder %v1508_v39, 0.0 }
 0x5d1   : > { %v2144_v63 = vpop.eup %2143 }
 0x5d2   : > { %v1513_v31 = vmul.f32 %v2144_v63, %v1508_v39  ;;  %v1511_v59 = vpop.xlane.xlu2 %1510 }
 0x5d3   : > { %2145 = vrsqrt.f32 %v1511_v59  ;;  %vm1531_vm1 = vcmp.eq.f32.partialorder %v1511_v59, inf  ;;  %v1534_v61 = vand.u32 2147483648, %v1511_v59  ;;  %vm1533_vm2 = vcmp.eq.f32.partialorder %v1511_v59, 0.0 }
 0x5d4   : > { %v1514_v48 = vmul.f32 %v2144_v63, %v1513_v31 }
 0x5d6   : > { %v1515_v50 = vmul.f32 0.5, %v1514_v48 }
 0x5d8   : > { %v1516_v30 = vsub.f32 1.5, %v1515_v50 }
 0x5d9   : > { %v2146_v17 = vpop.eup %2145 }
 0x5da   : > { %v1517_v18 = vmul.f32 %v2144_v63, %v1516_v30  ;;  %v1525_v52 = vmul.f32 %v2146_v17, %v1511_v59 }
 0x5dc   : > { %v1518_v46 = vmul.f32 %v1517_v18, %v1508_v39  ;;  %v1526_v32 = vmul.f32 %v2146_v17, %v1525_v52 }
 0x5de   : > { %v1520_v44 = vsel %vm1519_vm15, %v1508_v39, %v1518_v46  ;;  %v1527_v56 = vmul.f32 0.5, %v1526_v32 }
 0x5df   : > { %v1523_v58 = vsel %vm1521_vm0, %v1522_v55, %v1520_v44 }
 0x5e0   : > { %v1528_v60 = vsub.f32 1.5, %v1527_v56  ;;  %2147 = vtanh.f32 %v1523_v58 }
 0x5e1   : > { %2149 = vrcp.f32 %v1523_v58 }
 0x5e2   : > { %v1529_v21 = vmul.f32 %v2146_v17, %v1528_v60 }
 0x5e4   : > { %v1530_v14 = vmul.f32 %v1529_v21, %v1511_v59 }
 0x5e6   : > { %v2148_v0 = vpop.eup %2147  ;;  %v1532_v38 = vsel %vm1531_vm1, %v1511_v59, %v1530_v14 }
 0x5e7   : > { %v1548_v2 = vadd.f32 1e-07, %v2148_v0  ;;  %v1535_v3 = vsel %vm1533_vm2, %v1534_v61, %v1532_v38  ;;  %v2150_v9 = vpop.eup %2149  ;;  %vm1546_vm3 = vcmp.gt.f32.partialorder %v2148_v0, 0.99999 }
 0x5e8   : > { %2151 = vtanh.f32 %v1535_v3  ;;  %v1540_v35 = vmul.f32 %v2150_v9, %v2148_v0 }
 0x5e9   : > { %2153 = vrcp.f32 %v1548_v2 }
 0x5ea   : > { %2155 = vrcp.f32 %v1535_v3  ;;  %v1543_v54 = vmul.f32 %v1540_v35, %v1495_v29  ;;  %v1542_v23 = vmul.f32 %v1540_v35, %v2812_v7 }
 0x5ee   : > { %v2152_v51 = vpop.eup %2151 }
 0x5ef   : > { %v2154_v12 = vpop.eup %2153  ;;  %v1549_v42 = vadd.f32 1e-07, %v2152_v51  ;;  %vm1547_vm4 = vcmp.gt.f32.partialorder %v2152_v51, 0.99999 }
 0x5f0   : > { %v1552_v11 = vmul.f32 0.99999, %v2154_v12  ;;  %v2156_v15 = vpop.eup %2155 }
 0x5f1   : > { %2157 = vrcp.f32 %v1549_v42  ;;  %v1541_v22 = vmul.f32 %v2156_v15, %v2152_v51 }
 0x5f2   : > { %v1554_v20 = vsel %vm1546_vm3, %v1552_v11, 1.0 }
 0x5f3   : > { %v2827_v25 = vmul.f32 %v1554_v20, %v1543_v54  ;;  %v1560_v45 = vmul.f32 %v2148_v0, %v1554_v20  ;;  %v2829_v24 = vmul.f32 %v1554_v20, %v1542_v23  ;;  %v1545_v49 = vmul.f32 %v1541_v22, %v2819_v19 }
 0x5f4   : > { %v1544_v6 = vmul.f32 %v1541_v22, %v2817_v57 }
 0x5f5   : > { %v1569_v27 = vmul.f32 %v2493_v4, %v2827_v25  ;;  %v1564_v41 = vmul.f32 %v1560_v45, %v1560_v45 }
 0x5f7   : > { %v2158_v28 = vpop.eup %2157  ;;  %v1572_v62 = vadd.f32 %v1569_v27, %v2829_v24  ;;  %v1586_v19 = vmul.f32 %v1582_v13, %v1564_v41  ;;  %v1598_v18 = vsub.f32 1.0, %v1564_v41 }
 0x5f8   : > { %v1553_v1 = vmul.f32 0.99999, %v2158_v28 }
 0x5f9   : > { %1573 = vadd.xlane.f32.xlu0 %v1572_v62 }
 0x5fa   : > { %v1555_v34 = vsel %vm1547_vm4, %v1553_v1, 1.0 }
 0x5fb   : > { %v2836_v7 = vmul.f32 %v1555_v34, %v1545_v49  ;;  %v1561_v29 = vmul.f32 %v2152_v51, %v1555_v34  ;;  %v2838_v10 = vmul.f32 %v1555_v34, %v1544_v6 }
 0x5fd   : > { %v1571_v8 = vmul.f32 %v2493_v4, %v2836_v7  ;;  %v1563_v4 = vld [vmem:[%s2876_s6 + $0x8] sm:$0xff]  ;;  %v1565_v39 = vmul.f32 %v1561_v29, %v1561_v29 }
 0x5fe   : > { %v1567_v53 = vadd.f32 1e-05, %v1563_v4 }
 0x5ff   : > { %v1575_v47 = vadd.f32 %v1571_v8, %v2838_v10  ;;  %v1599_v38 = vsub.f32 1.0, %v1565_v39 }
 0x600   : > { %v1579_v5 = vmul.f32 2.0, %v1567_v53  ;;  %v1583_v31 = vmul.f32 %v1567_v53, %v1567_v53 }
 0x601   : > { %1576 = vadd.xlane.f32.xlu1 %v1575_v47 }
 0x602   : > { %v1587_v50 = vmul.f32 %v1583_v31, %v1565_v39 }
 0x66c   : > { %v1574_v57 = vpop.xlane.xlu0 %1573 }
 0x66d   : > { %v1580_v16 = vmul.f32 %v1578_v40, %v1574_v57 }
 0x66f   : > { %v1584_v43 = vadd.f32 1.0, %v1580_v16 }
 0x671   : > { %v1588_v26 = vadd.f32 %v1586_v19, %v1584_v43  ;;  %v1594_v52 = vadd.f32 %v1584_v43, %v1582_v13 }
 0x673   : > { %v1590_v63 = vadd.f32 1e-05, %v1588_v26 }
 0x674   : > { %v1577_v59 = vpop.xlane.xlu1 %1576 }
 0x675   : > { %2159 = vrcp.f32 %v1590_v63  ;;  %v1581_v48 = vmul.f32 %v1579_v5, %v1577_v59 }
 0x677   : > { %v1585_v30 = vadd.f32 1.0, %v1581_v48 }
 0x679   : > { %v1589_v17 = vadd.f32 %v1587_v50, %v1585_v30  ;;  %v1595_v2 = vadd.f32 %v1585_v30, %v1583_v31 }
 0x67b   : > { %v2160_v46 = vpop.eup %2159  ;;  %v1591_v32 = vadd.f32 1e-05, %v1589_v17 }
 0x67c   : > { %v1596_v55 = vmul.f32 %v2160_v46, %v1594_v52  ;;  %v1600_v44 = vmul.f32 %v2160_v46, %v1598_v18 }
 0x67d   : > { %2161 = vrcp.f32 %v1591_v32 }
 0x67e   : > { %v1602_v56 = vmul.f32 %v1600_v44, %v1566_v37  ;;  %v1632_v58 = vmul.f32 %v1596_v55, %v1596_v55  ;;  %v1636_v60 = vmul.f32 2.0, %v1596_v55  ;;  %1606 = vperm.xlu2 %2100, %v1596_v55  }
 0x680   : > { %v1638_v21 = vmul.f32 %v1636_v60, %v1602_v56  ;;  %v1644_v14 = vmul.f32 %v1602_v56, %v1602_v56  ;;  %1620 = vperm.xlu1 %2102, %v1602_v56   ;;  %v1634_v61 = vmul.f32 %v1632_v58, %v1564_v41 }
 0x682   : > { %v1640_v0 = vmul.f32 %v1638_v21, %v1574_v57  ;;  %v1646_v35 = vmul.f32 200.0, %v1644_v14 }
 0x683   : > { %v2162_v3 = vpop.eup %2161 }
 0x684   : > { %v1642_v9 = vadd.f32 %v1640_v0, %v1634_v61  ;;  %v1597_v51 = vmul.f32 %v2162_v3, %v1595_v2  ;;  %v1601_v12 = vmul.f32 %v2162_v3, %v1599_v38 }
 0x686   : > { %v1648_v42 = vadd.f32 %v1646_v35, %v1642_v9  ;;  %v1603_v11 = vmul.f32 %v1601_v12, %v1567_v53  ;;  %v1633_v54 = vmul.f32 %v1597_v51, %v1597_v51  ;;  %v1637_v15 = vmul.f32 2.0, %v1597_v51  ;;  %1611 = vperm.xlu0 %2101, %v1597_v51  }
 0x688   : > { %v1639_v20 = vmul.f32 %v1637_v15, %v1603_v11  ;;  %v1645_v23 = vmul.f32 %v1603_v11, %v1603_v11  ;;  %1625 = vperm.xlu2 %2100, %v1603_v11   ;;  %2163 = vrsqrt.f32 %v1648_v42  ;;  %v1635_v45 = vmul.f32 %v1633_v54, %v1565_v39 }
 0x689   : > { %vm1657_vm5 = vcmp.eq.f32.partialorder %v1648_v42, inf  ;;  %v1660_v40 = vand.u32 2147483648, %v1648_v42  ;;  %vm1659_vm6 = vcmp.eq.f32.partialorder %v1648_v42, 0.0 }
 0x68a   : > { %v1641_v27 = vmul.f32 %v1639_v20, %v1577_v59  ;;  %v1647_v28 = vmul.f32 200.0, %v1645_v23 }
 0x68c   : > { %v1643_v22 = vadd.f32 %v1641_v27, %v1635_v45 }
 0x68e   : > { %v2164_v62 = vpop.eup %2163  ;;  %v1649_v1 = vadd.f32 %v1647_v28, %v1643_v22 }
 0x68f   : > { %v1651_v49 = vmul.f32 %v2164_v62, %v1648_v42 }
 0x690   : > { %2165 = vrsqrt.f32 %v1649_v1  ;;  %vm1669_vm7 = vcmp.eq.f32.partialorder %v1649_v1, inf  ;;  %v1672_v53 = vand.u32 2147483648, %v1649_v1  ;;  %vm1671_vm8 = vcmp.eq.f32.partialorder %v1649_v1, 0.0 }
 0x691   : > { %v1652_v34 = vmul.f32 %v2164_v62, %v1651_v49 }
 0x693   : > { %v1653_v6 = vmul.f32 0.5, %v1652_v34 }
 0x695   : > { %v1654_v29 = vsub.f32 1.5, %v1653_v6 }
 0x696   : > { %v2166_v8 = vpop.eup %2165 }
 0x697   : > { %v1655_v47 = vmul.f32 %v2164_v62, %v1654_v29  ;;  %v1663_v33 = vmul.f32 %v2166_v8, %v1649_v1 }
 0x699   : > { %v1656_v36 = vmul.f32 %v1655_v47, %v1648_v42  ;;  %v1664_v37 = vmul.f32 %v2166_v8, %v1663_v33 }
 0x69b   : > { %v1658_v41 = vsel %vm1657_vm5, %v1648_v42, %v1656_v36  ;;  %v1665_v13 = vmul.f32 0.5, %v1664_v37 }
 0x69c   : > { %v1661_v57 = vsel %vm1659_vm6, %v1660_v40, %v1658_v41 }
 0x69d   : > { %v1676_v4 = vadd.f32 1e-07, %v1661_v57  ;;  %v1666_v16 = vsub.f32 1.5, %v1665_v13  ;;  %vm1674_vm9 = vcmp.gt.f32.partialorder %v1661_v57, 0.99999 }
 0x69f   : > { %2167 = vrcp.f32 %v1676_v4  ;;  %v1667_v19 = vmul.f32 %v2166_v8, %v1666_v16 }
 0x6a1   : > { %v1668_v43 = vmul.f32 %v1667_v19, %v1649_v1 }
 0x6a3   : > { %v1670_v26 = vsel %vm1669_vm7, %v1649_v1, %v1668_v43 }
 0x6a4   : > { %v1673_v5 = vsel %vm1671_vm8, %v1672_v53, %v1670_v26 }
 0x6a5   : > { %v2168_v39 = vpop.eup %2167  ;;  %v1677_v63 = vadd.f32 1e-07, %v1673_v5  ;;  %vm1675_vm10 = vcmp.gt.f32.partialorder %v1673_v5, 0.99999 }
 0x6a6   : > { %v1680_v31 = vmul.f32 0.99999, %v2168_v39 }
 0x6a7   : > { %2169 = vrcp.f32 %v1677_v63 }
 0x6a8   : > { %v1682_v59 = vsel %vm1674_vm9, %v1680_v31, 1.0 }
 0x6a9   : > { %1686 = vperm.xlu2 %2100, %v1682_v59  }
 0x6ad   : > { %v2170_v48 = vpop.eup %2169 }
 0x6ae   : > { %v1681_v50 = vmul.f32 0.99999, %v2170_v48 }
 0x6b0   : > { %v1683_v30 = vsel %vm1675_vm10, %v1681_v50, 1.0 }
 0x6b1   : > { %1691 = vperm.xlu1 %2102, %v1683_v30  }
 0x6d8   : > { %v1607_v17 = vpop.permute.xlu2 %1606 }
 0x6d9   : > { %v1614_v46 = vmul.f32 %v1607_v17, %v2829_v24  ;;  %v1615_v32 = vmul.f32 %v1607_v17, %v2827_v25 }
 0x6e2   : > { %v1626_v18 = vpop.permute.xlu2 %1625 }
 0x6f2   : > { %v1621_v52 = vpop.permute.xlu1 %1620 }
 0x6f3   : > { %v1628_v55 = vadd.f32 %v1621_v52, %v1614_v46  ;;  %v1629_v44 = vadd.f32 %v1621_v52, %v1615_v32 }
 0x6f8   : > { %v1612_v21 = vpop.permute.xlu0 %1611 }
 0x6f9   : > { %v1616_v14 = vmul.f32 %v1612_v21, %v2838_v10  ;;  %v1617_v61 = vmul.f32 %v1612_v21, %v2836_v7 }
 0x6fb   : > { %v1630_v0 = vadd.f32 %v1626_v18, %v1616_v14  ;;  %v1631_v38 = vadd.f32 %v1626_v18, %v1617_v61 }
 0x703   : > { %v1687_v56 = vpop.permute.xlu2 %1686 }
 0x704   : > { %v1694_v58 = vmul.f32 %v1687_v56, %v1628_v55  ;;  %v1695_v60 = vmul.f32 %v1687_v56, %v1629_v44 }
 0x706   : > { %1698 = vst [vmem:[#allocation11] sm:$0xff] %v1694_v58 }
 0x707   : > { %1699 = vst [vmem:[#allocation11 + $0x8] sm:$0xff] %v1695_v60 }
 0x723   : > { %v1692_v2 = vpop.permute.xlu1 %1691 }
 0x724   : > { %v1696_v3 = vmul.f32 %v1692_v2, %v1630_v0  ;;  %v1697_v9 = vmul.f32 %v1692_v2, %v1631_v38 }
 0x726   : > { %1700 = vst [vmem:[#allocation11 + $0x10] sm:$0xff] %v1696_v3 }
 0x727   : > { %1701 = vst [vmem:[#allocation11 + $0x18] sm:$0xff] %v1697_v9 }
 0x728 PF: > { %p1970_p4 = scmp.eq.s32.totalorder %s2409_s28, 1  ;;  %s2347_s12 = smov [#allocation11]  }
 0x729   : > { %s1707_s13 = sshll.u32 %s2347_s12, 4  ;;  %s1709_s14 = sshll.u32 %s2877_s7, 4  ;;  %s1708_s13 = int_to_ptr.vmem [resolvable:$true] %s1707_s13  ;;  %s1710_s14 = int_to_ptr.hbm [resolvable:$true] %s1709_s14 }
 0x72a   : > { %s2348_s15 = smov 256   ;;  %s2349_s18 = smov 16  }
 0x72b   : > { %1951 = dma.vmem_to_hbm [thread:$0]  (%p1970_p4), %s1708_s13, 512, %s1710_s14, [#allocation7], %s2348_s15, %s2348_s15, %s2349_s18  }
 0x72c   : > { %2318 = dma.done.wait (%p1970_p4), [#allocation7], 512  }
 0x72d   : > { %2320 = vsyncadd (%p1970_p4), [#allocation7], 4294966784 }
 0x72e PF: > { %p19_p5 = scmp.ge.s32.totalorder %s2440_s22, 4   ;;  %s2883_s24 = smov %s2327_s25 }
 0x72f   : > { %s2884_s25 = smov %s2331_s26  ;;  %s2885_s26 = smov %s2449_s30 }
 0x730   : > { %s2886_s27 = smov %s2440_s22  ;;  %21 = sbr.rel (!%p19_p5) target bundleno = 5 (0x5), region = 103 }
 0x735   :  { %1726 = vsyncpa [#allocation6], 1 }
 0x736   :  { %1728 = vsyncpa [#allocation6 + $0x1], 1 }
 0x737   :  { %1729 = vsyncpa [#allocation9], 1 }
 0x738   :  { %1731 = vsyncpa [#allocation9 + $0x1], 1 }
 0x739   :  { %1732 = vsyncpa [#allocation7], 1 }
 0x73a   :  { %1734 = vsyncpa [#allocation7 + $0x1], 1 }

</bundles_post_ra>
